<compile_context>
chip_gen: v7x
topology: tpu7x:2x2x1
jax: 0.10.0
libtpu: 0.0.40
codegen_flags: <defaults>
</compile_context>

<pallas_src>
import jax
import jax.numpy as jnp
from jax import lax
from jax.experimental import pallas as pl
from jax.experimental.pallas import tpu as pltpu

_SUB = 8      # f32 sublanes
_LANE = 128   # lanes


# ---------------------------------------------------------------------------
# padding helpers (wrapper-side, one-time)
# ---------------------------------------------------------------------------
def _round_up(n, m):
    return ((n + m - 1) // m) * m


def _pad_axis(x, axis, target):
    pad = target - x.shape[axis]
    if pad == 0:
        return x
    widths = [(0, 0)] * x.ndim
    widths[axis] = (0, pad)
    return jnp.pad(x, widths)


def _pad2(w, rows, cols):
    return _pad_axis(_pad_axis(w, 0, rows), 1, cols)


# ---------------------------------------------------------------------------
# Encoder kernel: masked tanh-RNN over a [T, B, D] sequence.
# Both encoders (src / conversation) run through the same kernel via grid=(2,).
# ---------------------------------------------------------------------------
def _encoder_kernel(len_ref, x_ref, wih_ref, whh_ref, b_ref,
                    mem_ref, hfin_ref, h_scr, xp_scr):
    T, B, D = x_ref.shape
    H = whh_ref.shape[-1]

    # Hoisted input projection: one large (T*B, D) @ (D, H) bf16 MXU matmul.
    xp = jnp.dot(x_ref[...].reshape(T * B, D), wih_ref[...],
                 preferred_element_type=jnp.float32) + b_ref[...]
    xp_scr[...] = xp.reshape(T, B, H)

    h_scr[...] = jnp.zeros_like(h_scr)
    len_col = len_ref[...]                                  # (B, 1) int32

    def step(t, carry):
        pre = xp_scr[t] + jnp.dot(h_scr[...].astype(jnp.bfloat16), whh_ref[...],
                                  preferred_element_type=jnp.float32)
        h_new = jnp.tanh(pre)                               # (B, H) f32
        mask = (t < len_col).astype(jnp.float32)            # (B, 1)
        # pack_padded_sequence: freeze final state at last valid step;
        # pad_packed_sequence: zero the memory bank past `lengths`.
        h_scr[...] = mask * h_new + (1.0 - mask) * h_scr[...]
        mem_ref[t] = (mask * h_new).astype(mem_ref.dtype)
        return carry

    lax.fori_loop(0, T, step, 0, unroll=True)
    hfin_ref[...] = h_scr[...]


def encoder_pair_forward(x_all, len_all, wih_all, whh_all, b_all):
    """x_all: (2, T, Bp, Dp) bf16; returns mem (2, T, Bp, Hp) bf16, hfin (2, Bp, Hp) f32."""
    n_enc, T, Bp, Dp = x_all.shape
    Hp = wih_all.shape[-1]
    mem_all, hfin_all = pl.pallas_call(
        _encoder_kernel,
        grid=(n_enc,),
        out_shape=(jax.ShapeDtypeStruct((n_enc, T, Bp, Hp), jnp.bfloat16),
                   jax.ShapeDtypeStruct((n_enc, Bp, Hp), jnp.float32)),
        in_specs=[
            pl.BlockSpec((None, Bp, 1), lambda i: (i, 0, 0)),
            pl.BlockSpec((None, T, Bp, Dp), lambda i: (i, 0, 0, 0)),
            pl.BlockSpec((None, Dp, Hp), lambda i: (i, 0, 0)),
            pl.BlockSpec((None, Hp, Hp), lambda i: (i, 0, 0)),
            pl.BlockSpec((None, 1, Hp), lambda i: (i, 0, 0)),
        ],
        out_specs=(
            pl.BlockSpec((None, T, Bp, Hp), lambda i: (i, 0, 0, 0)),
            pl.BlockSpec((None, Bp, Hp), lambda i: (i, 0, 0)),
        ),
        scratch_shapes=[pltpu.VMEM((Bp, Hp), jnp.float32),
                        pltpu.VMEM((T, Bp, Hp), jnp.float32)],
        compiler_params=pltpu.CompilerParams(
            dimension_semantics=("parallel",),
            vmem_limit_bytes=32 * 1024 * 1024),
    )(len_all, x_all, wih_all, whh_all, b_all)
    return mem_all, hfin_all


# ---------------------------------------------------------------------------
# Decoder kernel: bridge init state + tanh-RNN + global dot attention (MXU).
# ---------------------------------------------------------------------------
def _decoder_kernel(len_ref, tgt_ref, mem_ref, hsrc_ref, hconv_ref,
                    wbs_ref, wbc_ref, bbr_ref,
                    wih_ref, whh_ref, bd_ref,
                    wcc_ref, wch_ref, bc_ref,
                    out_ref, attn_ref, hfin_ref,
                    h_scr, xp_scr):
    Tt, B, D = tgt_ref.shape
    _, Ts, H = mem_ref.shape

    # init_decoder_state bridge, concat-free: tanh(h_src@Wb1 + h_conv@Wb2 + b).
    h_scr[...] = jnp.tanh(
        jnp.dot(hsrc_ref[...].astype(jnp.bfloat16), wbs_ref[...],
                preferred_element_type=jnp.float32)
        + jnp.dot(hconv_ref[...].astype(jnp.bfloat16), wbc_ref[...],
                  preferred_element_type=jnp.float32)
        + bbr_ref[...])

    # Hoisted input projection for every target timestep.
    xp = jnp.dot(tgt_ref[...].reshape(Tt * B, D), wih_ref[...],
                 preferred_element_type=jnp.float32) + bd_ref[...]
    xp_scr[...] = xp.reshape(Tt, B, H)

    mem = mem_ref[...]                                       # (B, Ts, H) bf16
    s_idx = lax.broadcasted_iota(jnp.int32, (B, Ts), 1)
    valid = s_idx < len_ref[...]                             # (B, Ts)
    neg_big = jnp.float32(-1e9)

    def step(t, carry):
        h_new = jnp.tanh(
            xp_scr[t] + jnp.dot(h_scr[...].astype(jnp.bfloat16), whh_ref[...],
                                preferred_element_type=jnp.float32))
        h_scr[...] = h_new
        h_bf = h_new.astype(jnp.bfloat16)

        # Global dot attention: batched MXU matmuls, lane-dense (B, Ts) scores.
        scores = jnp.einsum('bqh,bkh->bqk', h_bf[:, None, :], mem,
                            preferred_element_type=jnp.float32).reshape(B, Ts)
        scores = jnp.where(valid, scores, neg_big)
        m = jnp.max(scores, axis=1, keepdims=True)
        p = jnp.exp(scores - m)
        denom = jnp.sum(p, axis=1, keepdims=True)
        alpha = p * pl.reciprocal(denom, approx=True)        # (B, Ts)

        ctx = jnp.einsum('bqk,bkh->bqh',
                         alpha.astype(jnp.bfloat16)[:, None, :], mem,
                         preferred_element_type=jnp.float32).reshape(B, H)

        # attentional output, concat-free: tanh(ctx@Wc1 + h@Wc2 + b).
        o = jnp.tanh(
            jnp.dot(ctx.astype(jnp.bfloat16), wcc_ref[...],
                    preferred_element_type=jnp.float32)
            + jnp.dot(h_bf, wch_ref[...], preferred_element_type=jnp.float32)
            + bc_ref[...])

        out_ref[t] = o
        attn_ref[t] = alpha                                  # lane-dense store
        return carry

    lax.fori_loop(0, Tt, step, 0, unroll=True)
    hfin_ref[...] = h_scr[...]


def decoder_forward(tgt_in, mem_bt, len_src, h_src, h_conv,
                    wbs, wbc, bbr, wih, whh, bd, wcc, wch, bc):
    Tt, Bp, Dp = tgt_in.shape
    _, Ts, Hp = mem_bt.shape
    out, attn, hfin = pl.pallas_call(
        _decoder_kernel,
        out_shape=(jax.ShapeDtypeStruct((Tt, Bp, Hp), jnp.float32),
                   jax.ShapeDtypeStruct((Tt, Bp, Ts), jnp.float32),
                   jax.ShapeDtypeStruct((Bp, Hp), jnp.float32)),
        in_specs=[pl.BlockSpec(memory_space=pltpu.MemorySpace.VMEM)] * 14,
        out_specs=(pl.BlockSpec(memory_space=pltpu.MemorySpace.VMEM),
                   pl.BlockSpec(memory_space=pltpu.MemorySpace.VMEM),
                   pl.BlockSpec(memory_space=pltpu.MemorySpace.VMEM)),
        scratch_shapes=[pltpu.VMEM((Bp, Hp), jnp.float32),
                        pltpu.VMEM((Tt, Bp, Hp), jnp.float32)],
        compiler_params=pltpu.CompilerParams(vmem_limit_bytes=32 * 1024 * 1024),
    )(len_src, tgt_in, mem_bt, h_src, h_conv,
      wbs, wbc, bbr, wih, whh, bd, wcc, wch, bc)
    return out, attn, hfin


# ---------------------------------------------------------------------------
# TwoEncoderModel forward (wrapper: padding, bf16 casts, weight splitting)
# ---------------------------------------------------------------------------
def two_encoder_model_forward(src, conversation, tgt, lengths, params,
                              multigpu=False):
    """src: [src_len, B, D], conversation: [conv_len, B, D], tgt: [tgt_len, B, D],
    lengths: [B] int32 (valid src lengths)."""
    Ts_src, B, D = src.shape
    Tc = conversation.shape[0]
    H = params["enc_w_hh"].shape[0]
    Bp = _round_up(B, _SUB)
    Dp = _round_up(D, _LANE)
    Hp = _round_up(H, _LANE)
    T_enc = max(Ts_src, Tc)

    bf16, f32 = jnp.bfloat16, jnp.float32

    def prep_seq(x, t_target):
        x = _pad_axis(x, 0, t_target)
        x = _pad_axis(x, 1, Bp)
        x = _pad_axis(x, 2, Dp)
        return x.astype(bf16)

    src_p = prep_seq(src, T_enc)
    conv_p = prep_seq(conversation, T_enc)
    tgt_in = tgt[:-1]                                        # exclude last token
    tgt_p = prep_seq(tgt_in, tgt_in.shape[0])

    # padded batch rows get length 1 (avoids degenerate all-masked softmax rows)
    len_src = jnp.ones((Bp,), jnp.int32).at[:B].set(lengths.astype(jnp.int32))
    len_src = len_src.reshape(Bp, 1)
    len_conv = jnp.full((Bp, 1), Tc, jnp.int32)

    # ---- both encoders in one pallas_call (grid axis of size 2, parallel) ----
    x_all = jnp.stack([src_p, conv_p])                       # (2, T, Bp, Dp)
    len_all = jnp.stack([len_src, len_conv])                 # (2, Bp, 1)
    wih_all = jnp.stack([_pad2(params["enc_w_ih"], Dp, Hp),
                         _pad2(params["conv_w_ih"], Dp, Hp)]).astype(bf16)
    whh_all = jnp.stack([_pad2(params["enc_w_hh"], Hp, Hp),
                         _pad2(params["conv_w_hh"], Hp, Hp)]).astype(bf16)
    b_all = jnp.stack([_pad2(params["enc_b"], 1, Hp),
                       _pad2(params["conv_b"], 1, Hp)]).astype(f32)

    mem_all, hfin_all = encoder_pair_forward(x_all, len_all, wih_all, whh_all, b_all)
    memory_bank = mem_all[0]                                 # (T_enc, Bp, Hp) bf16
    h_src, h_conv = hfin_all[0], hfin_all[1]                 # (Bp, Hp) f32

    # one-time transpose to lane-dense attention layout (B, Ts, H)
    mem_bt = jnp.transpose(memory_bank, (1, 0, 2))

    # ---- decoder weights: split concat matmuls into halves, pad, cast bf16 ----
    wbs = _pad2(params["w_bridge"][:H], Hp, Hp).astype(bf16)
    wbc = _pad2(params["w_bridge"][H:], Hp, Hp).astype(bf16)
    bbr = _pad2(params["b_bridge"], 1, Hp).astype(f32)
    wih = _pad2(params["dec_w_ih"], Dp, Hp).astype(bf16)
    whh = _pad2(params["dec_w_hh"], Hp, Hp).astype(bf16)
    bd = _pad2(params["dec_b"], 1, Hp).astype(f32)
    wcc = _pad2(params["w_c"][:H], Hp, Hp).astype(bf16)
    wch = _pad2(params["w_c"][H:], Hp, Hp).astype(bf16)
    bc = _pad2(params["b_c"], 1, Hp).astype(f32)

    dec_out_p, attn_p, dec_state_p = decoder_forward(
        tgt_p, mem_bt, len_src, h_src, h_conv,
        wbs, wbc, bbr, wih, whh, bd, wcc, wch, bc)

    # strip the tile padding
    decoder_outputs = dec_out_p[:, :B, :H]
    attn_std = attn_p[:, :B, :Ts_src]
    dec_state = dec_state_p[:B, :H]

    attns = {"std": attn_std}
    if multigpu:
        dec_state = None
        attns = None
    return decoder_outputs, attns, dec_state


def init_params(key, dim, hidden):
    ks = jax.random.split(key, 12)
    s = 0.1
    return {
        "enc_w_ih":  s * jax.random.normal(ks[0], (dim, hidden), jnp.float32),
        "enc_w_hh":  s * jax.random.normal(ks[1], (hidden, hidden), jnp.float32),
        "enc_b":     s * jax.random.normal(ks[2], (1, hidden), jnp.float32),
        "conv_w_ih": s * jax.random.normal(ks[3], (dim, hidden), jnp.float32),
        "conv_w_hh": s * jax.random.normal(ks[4], (hidden, hidden), jnp.float32),
        "conv_b":    s * jax.random.normal(ks[5], (1, hidden), jnp.float32),
        "w_bridge":  s * jax.random.normal(ks[6], (2 * hidden, hidden), jnp.float32),
        "b_bridge":  s * jax.random.normal(ks[7], (1, hidden), jnp.float32),
        "dec_w_ih":  s * jax.random.normal(ks[8], (dim, hidden), jnp.float32),
        "dec_w_hh":  s * jax.random.normal(ks[9], (hidden, hidden), jnp.float32),
        "dec_b":     s * jax.random.normal(ks[10], (1, hidden), jnp.float32),
        "w_c":       s * jax.random.normal(ks[11], (2 * hidden, hidden), jnp.float32),
        "b_c":       jnp.zeros((1, hidden), jnp.float32),
    }


if __name__ == "__main__":
    B, D, H = 2, 16, 32
    src_len, conv_len, tgt_len = 8, 6, 6

    key = jax.random.PRNGKey(0)
    k_src, k_conv, k_tgt, k_par = jax.random.split(key, 4)

    src = jax.random.normal(k_src, (src_len, B, D), jnp.float32)
    conversation = jax.random.normal(k_conv, (conv_len, B, D), jnp.float32)
    tgt = jax.random.normal(k_tgt, (tgt_len, B, D), jnp.float32)
    lengths = jnp.array([src_len, src_len - 3], dtype=jnp.int32)

    params = init_params(k_par, D, H)

    dec_out, attns, dec_state = two_encoder_model_forward(
        src, conversation, tgt, lengths, params)

    jax.block_until_ready((dec_out, attns["std"], dec_state))

    assert dec_out.shape == (tgt_len - 1, B, H)
    assert attns["std"].shape == (tgt_len - 1, B, src_len)
    assert dec_state.shape == (B, H)
    # masked softmax sanity: attention rows sum to ~1 (bf16 matmuls +
    # approx-reciprocal normalization introduce ~1e-3 level error).
    assert jnp.allclose(jnp.sum(attns["std"], axis=-1), 1.0, atol=5e-3)

    print("KERNEL_OK")
</pallas_src>

<mosaic_0001>
module attributes {stable_mosaic.version = 11 : i64} {
  func.func @_encoder_kernel(%arg0: i32, %arg1: memref<1x8x1xi32, #tpu.memory_space<vmem>>, %arg2: memref<1x8x8x128xbf16, #tpu.memory_space<vmem>>, %arg3: memref<1x128x128xbf16, #tpu.memory_space<vmem>>, %arg4: memref<1x128x128xbf16, #tpu.memory_space<vmem>>, %arg5: memref<1x1x128xf32, #tpu.memory_space<vmem>>, %arg6: memref<1x8x8x128xbf16, #tpu.memory_space<vmem>>, %arg7: memref<1x8x128xf32, #tpu.memory_space<vmem>>, %arg8: memref<8x128xf32, #tpu.memory_space<vmem>>, %arg9: memref<8x8x128xf32, #tpu.memory_space<vmem>>) attributes {dimension_semantics = [#tpu.dimension_semantics<parallel>], iteration_bounds = array<i64: 2>, scalar_prefetch = 0 : i64, scratch_operands = 2 : i64, tpu.core_type = #tpu.core_type<tc>, window_params = [{transform_indices = @transform_0, window_bounds = array<i64: 1, 8, 1>}, {transform_indices = @transform_1, window_bounds = array<i64: 1, 8, 8, 128>}, {transform_indices = @transform_2, window_bounds = array<i64: 1, 128, 128>}, {transform_indices = @transform_3, window_bounds = array<i64: 1, 128, 128>}, {transform_indices = @transform_4, window_bounds = array<i64: 1, 1, 128>}, {transform_indices = @transform_5, window_bounds = array<i64: 1, 8, 8, 128>}, {transform_indices = @transform_6, window_bounds = array<i64: 1, 8, 128>}]} {
    %c0 = arith.constant 0 : index
    %c0_0 = arith.constant 0 : index
    %c0_1 = arith.constant 0 : index
    %c0_2 = arith.constant 0 : index
    %0 = vector.load %arg2[%c0, %c0_0, %c0_1, %c0_2] : memref<1x8x8x128xbf16, #tpu.memory_space<vmem>>, vector<1x8x8x128xbf16>
    %1 = vector.shape_cast %0 : vector<1x8x8x128xbf16> to vector<8x8x128xbf16>
    %2 = vector.shape_cast %1 : vector<8x8x128xbf16> to vector<64x128xbf16>
    %c0_3 = arith.constant 0 : index
    %c0_4 = arith.constant 0 : index
    %c0_5 = arith.constant 0 : index
    %3 = vector.load %arg3[%c0_3, %c0_4, %c0_5] : memref<1x128x128xbf16, #tpu.memory_space<vmem>>, vector<1x128x128xbf16>
    %4 = vector.shape_cast %3 : vector<1x128x128xbf16> to vector<128x128xbf16>
    %cst = arith.constant dense<0.000000e+00> : vector<64x128xf32>
    %5 = tpu.matmul %2, %4, %cst {dimension_numbers = #tpu.dot_dimension_numbers<[1], [0], [0], [1], [0, 0, 1, 1], [], []>} : vector<64x128xbf16>, vector<128x128xbf16>, vector<64x128xf32> -> vector<64x128xf32>
    %c0_6 = arith.constant 0 : index
    %c0_7 = arith.constant 0 : index
    %c0_8 = arith.constant 0 : index
    %6 = vector.load %arg5[%c0_6, %c0_7, %c0_8] : memref<1x1x128xf32, #tpu.memory_space<vmem>>, vector<1x1x128xf32>
    %7 = vector.shape_cast %6 : vector<1x1x128xf32> to vector<1x128xf32>
    %8 = vector.broadcast %7 : vector<1x128xf32> to vector<64x128xf32>
    %9 = arith.addf %5, %8 : vector<64x128xf32>
    %10 = vector.shape_cast %9 : vector<64x128xf32> to vector<8x8x128xf32>
    %c0_9 = arith.constant 0 : index
    %c0_10 = arith.constant 0 : index
    %c0_11 = arith.constant 0 : index
    %11 = vector.load %arg9[%c0_9, %c0_10, %c0_11] : memref<8x8x128xf32, #tpu.memory_space<vmem>>, vector<8x8x128xf32>
    tpu.vector_store %arg9[%c0_9, %c0_10, %c0_11], %10 {strides = array<i32>} : memref<8x8x128xf32, #tpu.memory_space<vmem>>, vector<8x8x128xf32>,
    %cst_12 = arith.constant 0.000000e+00 : f32
    %12 = vector.broadcast %cst_12 : f32 to vector<8x128xf32>
    %c0_13 = arith.constant 0 : index
    %c0_14 = arith.constant 0 : index
    %13 = vector.load %arg8[%c0_13, %c0_14] : memref<8x128xf32, #tpu.memory_space<vmem>>, vector<8x128xf32>
    tpu.vector_store %arg8[%c0_13, %c0_14], %12 {strides = array<i32>} : memref<8x128xf32, #tpu.memory_space<vmem>>, vector<8x128xf32>,
    %c0_15 = arith.constant 0 : index
    %c0_16 = arith.constant 0 : index
    %c0_17 = arith.constant 0 : index
    %14 = vector.load %arg1[%c0_15, %c0_16, %c0_17] : memref<1x8x1xi32, #tpu.memory_space<vmem>>, vector<1x8x1xi32>
    %15 = vector.shape_cast %14 : vector<1x8x1xi32> to vector<8x1xi32>
    %c0_i32 = arith.constant 0 : i32
    %16 = arith.index_cast %c0_i32 : i32 to index
    %c0_18 = arith.constant 0 : index
    %c0_19 = arith.constant 0 : index
    %17 = vector.load %arg9[%16, %c0_18, %c0_19] : memref<8x8x128xf32, #tpu.memory_space<vmem>>, vector<1x8x128xf32>
    %18 = vector.shape_cast %17 : vector<1x8x128xf32> to vector<8x128xf32>
    %c0_20 = arith.constant 0 : index
    %c0_21 = arith.constant 0 : index
    %19 = vector.load %arg8[%c0_20, %c0_21] : memref<8x128xf32, #tpu.memory_space<vmem>>, vector<8x128xf32>
    %20 = arith.truncf %19 : vector<8x128xf32> to vector<8x128xbf16>
    %c0_22 = arith.constant 0 : index
    %c0_23 = arith.constant 0 : index
    %c0_24 = arith.constant 0 : index
    %21 = vector.load %arg4[%c0_22, %c0_23, %c0_24] : memref<1x128x128xbf16, #tpu.memory_space<vmem>>, vector<1x128x128xbf16>
    %22 = vector.shape_cast %21 : vector<1x128x128xbf16> to vector<128x128xbf16>
    %cst_25 = arith.constant dense<0.000000e+00> : vector<8x128xf32>
    %23 = tpu.matmul %20, %22, %cst_25 {dimension_numbers = #tpu.dot_dimension_numbers<[1], [0], [0], [1], [0, 0, 1, 1], [], []>} : vector<8x128xbf16>, vector<128x128xbf16>, vector<8x128xf32> -> vector<8x128xf32>
    %24 = arith.addf %18, %23 : vector<8x128xf32>
    %25 = math.tanh %24 : vector<8x128xf32>
    %26 = vector.broadcast %c0_i32 : i32 to vector<8x1xi32>
    %27 = arith.cmpi slt, %26, %15 : vector<8x1xi32>
    %28 = arith.extui %27 : vector<8x1xi1> to vector<8x1xi32>
    %29 = arith.sitofp %28 : vector<8x1xi32> to vector<8x1xf32>
    %30 = vector.broadcast %29 : vector<8x1xf32> to vector<8x128xf32>
    %31 = arith.mulf %30, %25 : vector<8x128xf32>
    %cst_26 = arith.constant 1.000000e+00 : f32
    %32 = vector.broadcast %cst_26 : f32 to vector<8x1xf32>
    %33 = arith.subf %32, %29 : vector<8x1xf32>
    %c0_27 = arith.constant 0 : index
    %c0_28 = arith.constant 0 : index
    %34 = vector.load %arg8[%c0_27, %c0_28] : memref<8x128xf32, #tpu.memory_space<vmem>>, vector<8x128xf32>
    %35 = vector.broadcast %33 : vector<8x1xf32> to vector<8x128xf32>
    %36 = arith.mulf %35, %34 : vector<8x128xf32>
    %37 = arith.addf %31, %36 : vector<8x128xf32>
    %c0_29 = arith.constant 0 : index
    %c0_30 = arith.constant 0 : index
    %38 = vector.load %arg8[%c0_29, %c0_30] : memref<8x128xf32, #tpu.memory_space<vmem>>, vector<8x128xf32>
    tpu.vector_store %arg8[%c0_29, %c0_30], %37 {strides = array<i32>} : memref<8x128xf32, #tpu.memory_space<vmem>>, vector<8x128xf32>,
    %39 = vector.broadcast %29 : vector<8x1xf32> to vector<8x128xf32>
    %40 = arith.mulf %39, %25 : vector<8x128xf32>
    %41 = arith.truncf %40 : vector<8x128xf32> to vector<8x128xbf16>
    %c0_31 = arith.constant 0 : index
    %42 = arith.index_cast %c0_i32 : i32 to index
    %c0_32 = arith.constant 0 : index
    %c0_33 = arith.constant 0 : index
    %43 = vector.load %arg6[%c0_31, %42, %c0_32, %c0_33] : memref<1x8x8x128xbf16, #tpu.memory_space<vmem>>, vector<1x1x8x128xbf16>
    %44 = vector.shape_cast %43 : vector<1x1x8x128xbf16> to vector<8x128xbf16>
    %45 = vector.shape_cast %41 : vector<8x128xbf16> to vector<1x1x8x128xbf16>
    tpu.vector_store %arg6[%c0_31, %42, %c0_32, %c0_33], %45 {strides = array<i32>} : memref<1x8x8x128xbf16, #tpu.memory_space<vmem>>, vector<1x1x8x128xbf16>,
    %c1_i32 = arith.constant 1 : i32
    %46 = arith.index_cast %c1_i32 : i32 to index
    %c0_34 = arith.constant 0 : index
    %c0_35 = arith.constant 0 : index
    %47 = vector.load %arg9[%46, %c0_34, %c0_35] : memref<8x8x128xf32, #tpu.memory_space<vmem>>, vector<1x8x128xf32>
    %48 = vector.shape_cast %47 : vector<1x8x128xf32> to vector<8x128xf32>
    %c0_36 = arith.constant 0 : index
    %c0_37 = arith.constant 0 : index
    %49 = vector.load %arg8[%c0_36, %c0_37] : memref<8x128xf32, #tpu.memory_space<vmem>>, vector<8x128xf32>
    %50 = arith.truncf %49 : vector<8x128xf32> to vector<8x128xbf16>
    %c0_38 = arith.constant 0 : index
    %c0_39 = arith.constant 0 : index
    %c0_40 = arith.constant 0 : index
    %51 = vector.load %arg4[%c0_38, %c0_39, %c0_40] : memref<1x128x128xbf16, #tpu.memory_space<vmem>>, vector<1x128x128xbf16>
    %52 = vector.shape_cast %51 : vector<1x128x128xbf16> to vector<128x128xbf16>
    %cst_41 = arith.constant dense<0.000000e+00> : vector<8x128xf32>
    %53 = tpu.matmul %50, %52, %cst_41 {dimension_numbers = #tpu.dot_dimension_numbers<[1], [0], [0], [1], [0, 0, 1, 1], [], []>} : vector<8x128xbf16>, vector<128x128xbf16>, vector<8x128xf32> -> vector<8x128xf32>
    %54 = arith.addf %48, %53 : vector<8x128xf32>
    %55 = math.tanh %54 : vector<8x128xf32>
    %56 = vector.broadcast %c1_i32 : i32 to vector<8x1xi32>
    %57 = arith.cmpi slt, %56, %15 : vector<8x1xi32>
    %58 = arith.extui %57 : vector<8x1xi1> to vector<8x1xi32>
    %59 = arith.sitofp %58 : vector<8x1xi32> to vector<8x1xf32>
    %60 = vector.broadcast %59 : vector<8x1xf32> to vector<8x128xf32>
    %61 = arith.mulf %60, %55 : vector<8x128xf32>
    %cst_42 = arith.constant 1.000000e+00 : f32
    %62 = vector.broadcast %cst_42 : f32 to vector<8x1xf32>
    %63 = arith.subf %62, %59 : vector<8x1xf32>
    %c0_43 = arith.constant 0 : index
    %c0_44 = arith.constant 0 : index
    %64 = vector.load %arg8[%c0_43, %c0_44] : memref<8x128xf32, #tpu.memory_space<vmem>>, vector<8x128xf32>
    %65 = vector.broadcast %63 : vector<8x1xf32> to vector<8x128xf32>
    %66 = arith.mulf %65, %64 : vector<8x128xf32>
    %67 = arith.addf %61, %66 : vector<8x128xf32>
    %c0_45 = arith.constant 0 : index
    %c0_46 = arith.constant 0 : index
    %68 = vector.load %arg8[%c0_45, %c0_46] : memref<8x128xf32, #tpu.memory_space<vmem>>, vector<8x128xf32>
    tpu.vector_store %arg8[%c0_45, %c0_46], %67 {strides = array<i32>} : memref<8x128xf32, #tpu.memory_space<vmem>>, vector<8x128xf32>,
    %69 = vector.broadcast %59 : vector<8x1xf32> to vector<8x128xf32>
    %70 = arith.mulf %69, %55 : vector<8x128xf32>
    %71 = arith.truncf %70 : vector<8x128xf32> to vector<8x128xbf16>
    %c0_47 = arith.constant 0 : index
    %72 = arith.index_cast %c1_i32 : i32 to index
    %c0_48 = arith.constant 0 : index
    %c0_49 = arith.constant 0 : index
    %73 = vector.load %arg6[%c0_47, %72, %c0_48, %c0_49] : memref<1x8x8x128xbf16, #tpu.memory_space<vmem>>, vector<1x1x8x128xbf16>
    %74 = vector.shape_cast %73 : vector<1x1x8x128xbf16> to vector<8x128xbf16>
    %75 = vector.shape_cast %71 : vector<8x128xbf16> to vector<1x1x8x128xbf16>
    tpu.vector_store %arg6[%c0_47, %72, %c0_48, %c0_49], %75 {strides = array<i32>} : memref<1x8x8x128xbf16, #tpu.memory_space<vmem>>, vector<1x1x8x128xbf16>,
    %c2_i32 = arith.constant 2 : i32
    %76 = arith.index_cast %c2_i32 : i32 to index
    %c0_50 = arith.constant 0 : index
    %c0_51 = arith.constant 0 : index
    %77 = vector.load %arg9[%76, %c0_50, %c0_51] : memref<8x8x128xf32, #tpu.memory_space<vmem>>, vector<1x8x128xf32>
    %78 = vector.shape_cast %77 : vector<1x8x128xf32> to vector<8x128xf32>
    %c0_52 = arith.constant 0 : index
    %c0_53 = arith.constant 0 : index
    %79 = vector.load %arg8[%c0_52, %c0_53] : memref<8x128xf32, #tpu.memory_space<vmem>>, vector<8x128xf32>
    %80 = arith.truncf %79 : vector<8x128xf32> to vector<8x128xbf16>
    %c0_54 = arith.constant 0 : index
    %c0_55 = arith.constant 0 : index
    %c0_56 = arith.constant 0 : index
    %81 = vector.load %arg4[%c0_54, %c0_55, %c0_56] : memref<1x128x128xbf16, #tpu.memory_space<vmem>>, vector<1x128x128xbf16>
    %82 = vector.shape_cast %81 : vector<1x128x128xbf16> to vector<128x128xbf16>
    %cst_57 = arith.constant dense<0.000000e+00> : vector<8x128xf32>
    %83 = tpu.matmul %80, %82, %cst_57 {dimension_numbers = #tpu.dot_dimension_numbers<[1], [0], [0], [1], [0, 0, 1, 1], [], []>} : vector<8x128xbf16>, vector<128x128xbf16>, vector<8x128xf32> -> vector<8x128xf32>
    %84 = arith.addf %78, %83 : vector<8x128xf32>
    %85 = math.tanh %84 : vector<8x128xf32>
    %86 = vector.broadcast %c2_i32 : i32 to vector<8x1xi32>
    %87 = arith.cmpi slt, %86, %15 : vector<8x1xi32>
    %88 = arith.extui %87 : vector<8x1xi1> to vector<8x1xi32>
    %89 = arith.sitofp %88 : vector<8x1xi32> to vector<8x1xf32>
    %90 = vector.broadcast %89 : vector<8x1xf32> to vector<8x128xf32>
    %91 = arith.mulf %90, %85 : vector<8x128xf32>
    %cst_58 = arith.constant 1.000000e+00 : f32
    %92 = vector.broadcast %cst_58 : f32 to vector<8x1xf32>
    %93 = arith.subf %92, %89 : vector<8x1xf32>
    %c0_59 = arith.constant 0 : index
    %c0_60 = arith.constant 0 : index
    %94 = vector.load %arg8[%c0_59, %c0_60] : memref<8x128xf32, #tpu.memory_space<vmem>>, vector<8x128xf32>
    %95 = vector.broadcast %93 : vector<8x1xf32> to vector<8x128xf32>
    %96 = arith.mulf %95, %94 : vector<8x128xf32>
    %97 = arith.addf %91, %96 : vector<8x128xf32>
    %c0_61 = arith.constant 0 : index
    %c0_62 = arith.constant 0 : index
    %98 = vector.load %arg8[%c0_61, %c0_62] : memref<8x128xf32, #tpu.memory_space<vmem>>, vector<8x128xf32>
    tpu.vector_store %arg8[%c0_61, %c0_62], %97 {strides = array<i32>} : memref<8x128xf32, #tpu.memory_space<vmem>>, vector<8x128xf32>,
    %99 = vector.broadcast %89 : vector<8x1xf32> to vector<8x128xf32>
    %100 = arith.mulf %99, %85 : vector<8x128xf32>
    %101 = arith.truncf %100 : vector<8x128xf32> to vector<8x128xbf16>
    %c0_63 = arith.constant 0 : index
    %102 = arith.index_cast %c2_i32 : i32 to index
    %c0_64 = arith.constant 0 : index
    %c0_65 = arith.constant 0 : index
    %103 = vector.load %arg6[%c0_63, %102, %c0_64, %c0_65] : memref<1x8x8x128xbf16, #tpu.memory_space<vmem>>, vector<1x1x8x128xbf16>
    %104 = vector.shape_cast %103 : vector<1x1x8x128xbf16> to vector<8x128xbf16>
    %105 = vector.shape_cast %101 : vector<8x128xbf16> to vector<1x1x8x128xbf16>
    tpu.vector_store %arg6[%c0_63, %102, %c0_64, %c0_65], %105 {strides = array<i32>} : memref<1x8x8x128xbf16, #tpu.memory_space<vmem>>, vector<1x1x8x128xbf16>,
    %c3_i32 = arith.constant 3 : i32
    %106 = arith.index_cast %c3_i32 : i32 to index
    %c0_66 = arith.constant 0 : index
    %c0_67 = arith.constant 0 : index
    %107 = vector.load %arg9[%106, %c0_66, %c0_67] : memref<8x8x128xf32, #tpu.memory_space<vmem>>, vector<1x8x128xf32>
    %108 = vector.shape_cast %107 : vector<1x8x128xf32> to vector<8x128xf32>
    %c0_68 = arith.constant 0 : index
    %c0_69 = arith.constant 0 : index
    %109 = vector.load %arg8[%c0_68, %c0_69] : memref<8x128xf32, #tpu.memory_space<vmem>>, vector<8x128xf32>
    %110 = arith.truncf %109 : vector<8x128xf32> to vector<8x128xbf16>
    %c0_70 = arith.constant 0 : index
    %c0_71 = arith.constant 0 : index
    %c0_72 = arith.constant 0 : index
    %111 = vector.load %arg4[%c0_70, %c0_71, %c0_72] : memref<1x128x128xbf16, #tpu.memory_space<vmem>>, vector<1x128x128xbf16>
    %112 = vector.shape_cast %111 : vector<1x128x128xbf16> to vector<128x128xbf16>
    %cst_73 = arith.constant dense<0.000000e+00> : vector<8x128xf32>
    %113 = tpu.matmul %110, %112, %cst_73 {dimension_numbers = #tpu.dot_dimension_numbers<[1], [0], [0], [1], [0, 0, 1, 1], [], []>} : vector<8x128xbf16>, vector<128x128xbf16>, vector<8x128xf32> -> vector<8x128xf32>
    %114 = arith.addf %108, %113 : vector<8x128xf32>
    %115 = math.tanh %114 : vector<8x128xf32>
    %116 = vector.broadcast %c3_i32 : i32 to vector<8x1xi32>
    %117 = arith.cmpi slt, %116, %15 : vector<8x1xi32>
    %118 = arith.extui %117 : vector<8x1xi1> to vector<8x1xi32>
    %119 = arith.sitofp %118 : vector<8x1xi32> to vector<8x1xf32>
    %120 = vector.broadcast %119 : vector<8x1xf32> to vector<8x128xf32>
    %121 = arith.mulf %120, %115 : vector<8x128xf32>
    %cst_74 = arith.constant 1.000000e+00 : f32
    %122 = vector.broadcast %cst_74 : f32 to vector<8x1xf32>
    %123 = arith.subf %122, %119 : vector<8x1xf32>
    %c0_75 = arith.constant 0 : index
    %c0_76 = arith.constant 0 : index
    %124 = vector.load %arg8[%c0_75, %c0_76] : memref<8x128xf32, #tpu.memory_space<vmem>>, vector<8x128xf32>
    %125 = vector.broadcast %123 : vector<8x1xf32> to vector<8x128xf32>
    %126 = arith.mulf %125, %124 : vector<8x128xf32>
    %127 = arith.addf %121, %126 : vector<8x128xf32>
    %c0_77 = arith.constant 0 : index
    %c0_78 = arith.constant 0 : index
    %128 = vector.load %arg8[%c0_77, %c0_78] : memref<8x128xf32, #tpu.memory_space<vmem>>, vector<8x128xf32>
    tpu.vector_store %arg8[%c0_77, %c0_78], %127 {strides = array<i32>} : memref<8x128xf32, #tpu.memory_space<vmem>>, vector<8x128xf32>,
    %129 = vector.broadcast %119 : vector<8x1xf32> to vector<8x128xf32>
    %130 = arith.mulf %129, %115 : vector<8x128xf32>
    %131 = arith.truncf %130 : vector<8x128xf32> to vector<8x128xbf16>
    %c0_79 = arith.constant 0 : index
    %132 = arith.index_cast %c3_i32 : i32 to index
    %c0_80 = arith.constant 0 : index
    %c0_81 = arith.constant 0 : index
    %133 = vector.load %arg6[%c0_79, %132, %c0_80, %c0_81] : memref<1x8x8x128xbf16, #tpu.memory_space<vmem>>, vector<1x1x8x128xbf16>
    %134 = vector.shape_cast %133 : vector<1x1x8x128xbf16> to vector<8x128xbf16>
    %135 = vector.shape_cast %131 : vector<8x128xbf16> to vector<1x1x8x128xbf16>
    tpu.vector_store %arg6[%c0_79, %132, %c0_80, %c0_81], %135 {strides = array<i32>} : memref<1x8x8x128xbf16, #tpu.memory_space<vmem>>, vector<1x1x8x128xbf16>,
    %c4_i32 = arith.constant 4 : i32
    %136 = arith.index_cast %c4_i32 : i32 to index
    %c0_82 = arith.constant 0 : index
    %c0_83 = arith.constant 0 : index
    %137 = vector.load %arg9[%136, %c0_82, %c0_83] : memref<8x8x128xf32, #tpu.memory_space<vmem>>, vector<1x8x128xf32>
    %138 = vector.shape_cast %137 : vector<1x8x128xf32> to vector<8x128xf32>
    %c0_84 = arith.constant 0 : index
    %c0_85 = arith.constant 0 : index
    %139 = vector.load %arg8[%c0_84, %c0_85] : memref<8x128xf32, #tpu.memory_space<vmem>>, vector<8x128xf32>
    %140 = arith.truncf %139 : vector<8x128xf32> to vector<8x128xbf16>
    %c0_86 = arith.constant 0 : index
    %c0_87 = arith.constant 0 : index
    %c0_88 = arith.constant 0 : index
    %141 = vector.load %arg4[%c0_86, %c0_87, %c0_88] : memref<1x128x128xbf16, #tpu.memory_space<vmem>>, vector<1x128x128xbf16>
    %142 = vector.shape_cast %141 : vector<1x128x128xbf16> to vector<128x128xbf16>
    %cst_89 = arith.constant dense<0.000000e+00> : vector<8x128xf32>
    %143 = tpu.matmul %140, %142, %cst_89 {dimension_numbers = #tpu.dot_dimension_numbers<[1], [0], [0], [1], [0, 0, 1, 1], [], []>} : vector<8x128xbf16>, vector<128x128xbf16>, vector<8x128xf32> -> vector<8x128xf32>
    %144 = arith.addf %138, %143 : vector<8x128xf32>
    %145 = math.tanh %144 : vector<8x128xf32>
    %146 = vector.broadcast %c4_i32 : i32 to vector<8x1xi32>
    %147 = arith.cmpi slt, %146, %15 : vector<8x1xi32>
    %148 = arith.extui %147 : vector<8x1xi1> to vector<8x1xi32>
    %149 = arith.sitofp %148 : vector<8x1xi32> to vector<8x1xf32>
    %150 = vector.broadcast %149 : vector<8x1xf32> to vector<8x128xf32>
    %151 = arith.mulf %150, %145 : vector<8x128xf32>
    %cst_90 = arith.constant 1.000000e+00 : f32
    %152 = vector.broadcast %cst_90 : f32 to vector<8x1xf32>
    %153 = arith.subf %152, %149 : vector<8x1xf32>
    %c0_91 = arith.constant 0 : index
    %c0_92 = arith.constant 0 : index
    %154 = vector.load %arg8[%c0_91, %c0_92] : memref<8x128xf32, #tpu.memory_space<vmem>>, vector<8x128xf32>
    %155 = vector.broadcast %153 : vector<8x1xf32> to vector<8x128xf32>
    %156 = arith.mulf %155, %154 : vector<8x128xf32>
    %157 = arith.addf %151, %156 : vector<8x128xf32>
    %c0_93 = arith.constant 0 : index
    %c0_94 = arith.constant 0 : index
    %158 = vector.load %arg8[%c0_93, %c0_94] : memref<8x128xf32, #tpu.memory_space<vmem>>, vector<8x128xf32>
    tpu.vector_store %arg8[%c0_93, %c0_94], %157 {strides = array<i32>} : memref<8x128xf32, #tpu.memory_space<vmem>>, vector<8x128xf32>,
    %159 = vector.broadcast %149 : vector<8x1xf32> to vector<8x128xf32>
    %160 = arith.mulf %159, %145 : vector<8x128xf32>
    %161 = arith.truncf %160 : vector<8x128xf32> to vector<8x128xbf16>
    %c0_95 = arith.constant 0 : index
    %162 = arith.index_cast %c4_i32 : i32 to index
    %c0_96 = arith.constant 0 : index
    %c0_97 = arith.constant 0 : index
    %163 = vector.load %arg6[%c0_95, %162, %c0_96, %c0_97] : memref<1x8x8x128xbf16, #tpu.memory_space<vmem>>, vector<1x1x8x128xbf16>
    %164 = vector.shape_cast %163 : vector<1x1x8x128xbf16> to vector<8x128xbf16>
    %165 = vector.shape_cast %161 : vector<8x128xbf16> to vector<1x1x8x128xbf16>
    tpu.vector_store %arg6[%c0_95, %162, %c0_96, %c0_97], %165 {strides = array<i32>} : memref<1x8x8x128xbf16, #tpu.memory_space<vmem>>, vector<1x1x8x128xbf16>,
    %c5_i32 = arith.constant 5 : i32
    %166 = arith.index_cast %c5_i32 : i32 to index
    %c0_98 = arith.constant 0 : index
    %c0_99 = arith.constant 0 : index
    %167 = vector.load %arg9[%166, %c0_98, %c0_99] : memref<8x8x128xf32, #tpu.memory_space<vmem>>, vector<1x8x128xf32>
    %168 = vector.shape_cast %167 : vector<1x8x128xf32> to vector<8x128xf32>
    %c0_100 = arith.constant 0 : index
    %c0_101 = arith.constant 0 : index
    %169 = vector.load %arg8[%c0_100, %c0_101] : memref<8x128xf32, #tpu.memory_space<vmem>>, vector<8x128xf32>
    %170 = arith.truncf %169 : vector<8x128xf32> to vector<8x128xbf16>
    %c0_102 = arith.constant 0 : index
    %c0_103 = arith.constant 0 : index
    %c0_104 = arith.constant 0 : index
    %171 = vector.load %arg4[%c0_102, %c0_103, %c0_104] : memref<1x128x128xbf16, #tpu.memory_space<vmem>>, vector<1x128x128xbf16>
    %172 = vector.shape_cast %171 : vector<1x128x128xbf16> to vector<128x128xbf16>
    %cst_105 = arith.constant dense<0.000000e+00> : vector<8x128xf32>
    %173 = tpu.matmul %170, %172, %cst_105 {dimension_numbers = #tpu.dot_dimension_numbers<[1], [0], [0], [1], [0, 0, 1, 1], [], []>} : vector<8x128xbf16>, vector<128x128xbf16>, vector<8x128xf32> -> vector<8x128xf32>
    %174 = arith.addf %168, %173 : vector<8x128xf32>
    %175 = math.tanh %174 : vector<8x128xf32>
    %176 = vector.broadcast %c5_i32 : i32 to vector<8x1xi32>
    %177 = arith.cmpi slt, %176, %15 : vector<8x1xi32>
    %178 = arith.extui %177 : vector<8x1xi1> to vector<8x1xi32>
    %179 = arith.sitofp %178 : vector<8x1xi32> to vector<8x1xf32>
    %180 = vector.broadcast %179 : vector<8x1xf32> to vector<8x128xf32>
    %181 = arith.mulf %180, %175 : vector<8x128xf32>
    %cst_106 = arith.constant 1.000000e+00 : f32
    %182 = vector.broadcast %cst_106 : f32 to vector<8x1xf32>
    %183 = arith.subf %182, %179 : vector<8x1xf32>
    %c0_107 = arith.constant 0 : index
    %c0_108 = arith.constant 0 : index
    %184 = vector.load %arg8[%c0_107, %c0_108] : memref<8x128xf32, #tpu.memory_space<vmem>>, vector<8x128xf32>
    %185 = vector.broadcast %183 : vector<8x1xf32> to vector<8x128xf32>
    %186 = arith.mulf %185, %184 : vector<8x128xf32>
    %187 = arith.addf %181, %186 : vector<8x128xf32>
    %c0_109 = arith.constant 0 : index
    %c0_110 = arith.constant 0 : index
    %188 = vector.load %arg8[%c0_109, %c0_110] : memref<8x128xf32, #tpu.memory_space<vmem>>, vector<8x128xf32>
    tpu.vector_store %arg8[%c0_109, %c0_110], %187 {strides = array<i32>} : memref<8x128xf32, #tpu.memory_space<vmem>>, vector<8x128xf32>,
    %189 = vector.broadcast %179 : vector<8x1xf32> to vector<8x128xf32>
    %190 = arith.mulf %189, %175 : vector<8x128xf32>
    %191 = arith.truncf %190 : vector<8x128xf32> to vector<8x128xbf16>
    %c0_111 = arith.constant 0 : index
    %192 = arith.index_cast %c5_i32 : i32 to index
    %c0_112 = arith.constant 0 : index
    %c0_113 = arith.constant 0 : index
    %193 = vector.load %arg6[%c0_111, %192, %c0_112, %c0_113] : memref<1x8x8x128xbf16, #tpu.memory_space<vmem>>, vector<1x1x8x128xbf16>
    %194 = vector.shape_cast %193 : vector<1x1x8x128xbf16> to vector<8x128xbf16>
    %195 = vector.shape_cast %191 : vector<8x128xbf16> to vector<1x1x8x128xbf16>
    tpu.vector_store %arg6[%c0_111, %192, %c0_112, %c0_113], %195 {strides = array<i32>} : memref<1x8x8x128xbf16, #tpu.memory_space<vmem>>, vector<1x1x8x128xbf16>,
    %c6_i32 = arith.constant 6 : i32
    %196 = arith.index_cast %c6_i32 : i32 to index
    %c0_114 = arith.constant 0 : index
    %c0_115 = arith.constant 0 : index
    %197 = vector.load %arg9[%196, %c0_114, %c0_115] : memref<8x8x128xf32, #tpu.memory_space<vmem>>, vector<1x8x128xf32>
    %198 = vector.shape_cast %197 : vector<1x8x128xf32> to vector<8x128xf32>
    %c0_116 = arith.constant 0 : index
    %c0_117 = arith.constant 0 : index
    %199 = vector.load %arg8[%c0_116, %c0_117] : memref<8x128xf32, #tpu.memory_space<vmem>>, vector<8x128xf32>
    %200 = arith.truncf %199 : vector<8x128xf32> to vector<8x128xbf16>
    %c0_118 = arith.constant 0 : index
    %c0_119 = arith.constant 0 : index
    %c0_120 = arith.constant 0 : index
    %201 = vector.load %arg4[%c0_118, %c0_119, %c0_120] : memref<1x128x128xbf16, #tpu.memory_space<vmem>>, vector<1x128x128xbf16>
    %202 = vector.shape_cast %201 : vector<1x128x128xbf16> to vector<128x128xbf16>
    %cst_121 = arith.constant dense<0.000000e+00> : vector<8x128xf32>
    %203 = tpu.matmul %200, %202, %cst_121 {dimension_numbers = #tpu.dot_dimension_numbers<[1], [0], [0], [1], [0, 0, 1, 1], [], []>} : vector<8x128xbf16>, vector<128x128xbf16>, vector<8x128xf32> -> vector<8x128xf32>
    %204 = arith.addf %198, %203 : vector<8x128xf32>
    %205 = math.tanh %204 : vector<8x128xf32>
    %206 = vector.broadcast %c6_i32 : i32 to vector<8x1xi32>
    %207 = arith.cmpi slt, %206, %15 : vector<8x1xi32>
    %208 = arith.extui %207 : vector<8x1xi1> to vector<8x1xi32>
    %209 = arith.sitofp %208 : vector<8x1xi32> to vector<8x1xf32>
    %210 = vector.broadcast %209 : vector<8x1xf32> to vector<8x128xf32>
    %211 = arith.mulf %210, %205 : vector<8x128xf32>
    %cst_122 = arith.constant 1.000000e+00 : f32
    %212 = vector.broadcast %cst_122 : f32 to vector<8x1xf32>
    %213 = arith.subf %212, %209 : vector<8x1xf32>
    %c0_123 = arith.constant 0 : index
    %c0_124 = arith.constant 0 : index
    %214 = vector.load %arg8[%c0_123, %c0_124] : memref<8x128xf32, #tpu.memory_space<vmem>>, vector<8x128xf32>
    %215 = vector.broadcast %213 : vector<8x1xf32> to vector<8x128xf32>
    %216 = arith.mulf %215, %214 : vector<8x128xf32>
    %217 = arith.addf %211, %216 : vector<8x128xf32>
    %c0_125 = arith.constant 0 : index
    %c0_126 = arith.constant 0 : index
    %218 = vector.load %arg8[%c0_125, %c0_126] : memref<8x128xf32, #tpu.memory_space<vmem>>, vector<8x128xf32>
    tpu.vector_store %arg8[%c0_125, %c0_126], %217 {strides = array<i32>} : memref<8x128xf32, #tpu.memory_space<vmem>>, vector<8x128xf32>,
    %219 = vector.broadcast %209 : vector<8x1xf32> to vector<8x128xf32>
    %220 = arith.mulf %219, %205 : vector<8x128xf32>
    %221 = arith.truncf %220 : vector<8x128xf32> to vector<8x128xbf16>
    %c0_127 = arith.constant 0 : index
    %222 = arith.index_cast %c6_i32 : i32 to index
    %c0_128 = arith.constant 0 : index
    %c0_129 = arith.constant 0 : index
    %223 = vector.load %arg6[%c0_127, %222, %c0_128, %c0_129] : memref<1x8x8x128xbf16, #tpu.memory_space<vmem>>, vector<1x1x8x128xbf16>
    %224 = vector.shape_cast %223 : vector<1x1x8x128xbf16> to vector<8x128xbf16>
    %225 = vector.shape_cast %221 : vector<8x128xbf16> to vector<1x1x8x128xbf16>
    tpu.vector_store %arg6[%c0_127, %222, %c0_128, %c0_129], %225 {strides = array<i32>} : memref<1x8x8x128xbf16, #tpu.memory_space<vmem>>, vector<1x1x8x128xbf16>,
    %c7_i32 = arith.constant 7 : i32
    %226 = arith.index_cast %c7_i32 : i32 to index
    %c0_130 = arith.constant 0 : index
    %c0_131 = arith.constant 0 : index
    %227 = vector.load %arg9[%226, %c0_130, %c0_131] : memref<8x8x128xf32, #tpu.memory_space<vmem>>, vector<1x8x128xf32>
    %228 = vector.shape_cast %227 : vector<1x8x128xf32> to vector<8x128xf32>
    %c0_132 = arith.constant 0 : index
    %c0_133 = arith.constant 0 : index
    %229 = vector.load %arg8[%c0_132, %c0_133] : memref<8x128xf32, #tpu.memory_space<vmem>>, vector<8x128xf32>
    %230 = arith.truncf %229 : vector<8x128xf32> to vector<8x128xbf16>
    %c0_134 = arith.constant 0 : index
    %c0_135 = arith.constant 0 : index
    %c0_136 = arith.constant 0 : index
    %231 = vector.load %arg4[%c0_134, %c0_135, %c0_136] : memref<1x128x128xbf16, #tpu.memory_space<vmem>>, vector<1x128x128xbf16>
    %232 = vector.shape_cast %231 : vector<1x128x128xbf16> to vector<128x128xbf16>
    %cst_137 = arith.constant dense<0.000000e+00> : vector<8x128xf32>
    %233 = tpu.matmul %230, %232, %cst_137 {dimension_numbers = #tpu.dot_dimension_numbers<[1], [0], [0], [1], [0, 0, 1, 1], [], []>} : vector<8x128xbf16>, vector<128x128xbf16>, vector<8x128xf32> -> vector<8x128xf32>
    %234 = arith.addf %228, %233 : vector<8x128xf32>
    %235 = math.tanh %234 : vector<8x128xf32>
    %236 = vector.broadcast %c7_i32 : i32 to vector<8x1xi32>
    %237 = arith.cmpi slt, %236, %15 : vector<8x1xi32>
    %238 = arith.extui %237 : vector<8x1xi1> to vector<8x1xi32>
    %239 = arith.sitofp %238 : vector<8x1xi32> to vector<8x1xf32>
    %240 = vector.broadcast %239 : vector<8x1xf32> to vector<8x128xf32>
    %241 = arith.mulf %240, %235 : vector<8x128xf32>
    %cst_138 = arith.constant 1.000000e+00 : f32
    %242 = vector.broadcast %cst_138 : f32 to vector<8x1xf32>
    %243 = arith.subf %242, %239 : vector<8x1xf32>
    %c0_139 = arith.constant 0 : index
    %c0_140 = arith.constant 0 : index
    %244 = vector.load %arg8[%c0_139, %c0_140] : memref<8x128xf32, #tpu.memory_space<vmem>>, vector<8x128xf32>
    %245 = vector.broadcast %243 : vector<8x1xf32> to vector<8x128xf32>
    %246 = arith.mulf %245, %244 : vector<8x128xf32>
    %247 = arith.addf %241, %246 : vector<8x128xf32>
    %c0_141 = arith.constant 0 : index
    %c0_142 = arith.constant 0 : index
    %248 = vector.load %arg8[%c0_141, %c0_142] : memref<8x128xf32, #tpu.memory_space<vmem>>, vector<8x128xf32>
    tpu.vector_store %arg8[%c0_141, %c0_142], %247 {strides = array<i32>} : memref<8x128xf32, #tpu.memory_space<vmem>>, vector<8x128xf32>,
    %249 = vector.broadcast %239 : vector<8x1xf32> to vector<8x128xf32>
    %250 = arith.mulf %249, %235 : vector<8x128xf32>
    %251 = arith.truncf %250 : vector<8x128xf32> to vector<8x128xbf16>
    %c0_143 = arith.constant 0 : index
    %252 = arith.index_cast %c7_i32 : i32 to index
    %c0_144 = arith.constant 0 : index
    %c0_145 = arith.constant 0 : index
    %253 = vector.load %arg6[%c0_143, %252, %c0_144, %c0_145] : memref<1x8x8x128xbf16, #tpu.memory_space<vmem>>, vector<1x1x8x128xbf16>
    %254 = vector.shape_cast %253 : vector<1x1x8x128xbf16> to vector<8x128xbf16>
    %255 = vector.shape_cast %251 : vector<8x128xbf16> to vector<1x1x8x128xbf16>
    tpu.vector_store %arg6[%c0_143, %252, %c0_144, %c0_145], %255 {strides = array<i32>} : memref<1x8x8x128xbf16, #tpu.memory_space<vmem>>, vector<1x1x8x128xbf16>,
    %c8_i32 = arith.constant 8 : i32
    %c0_146 = arith.constant 0 : index
    %c0_147 = arith.constant 0 : index
    %256 = vector.load %arg8[%c0_146, %c0_147] : memref<8x128xf32, #tpu.memory_space<vmem>>, vector<8x128xf32>
    %c0_148 = arith.constant 0 : index
    %c0_149 = arith.constant 0 : index
    %c0_150 = arith.constant 0 : index
    %257 = vector.load %arg7[%c0_148, %c0_149, %c0_150] : memref<1x8x128xf32, #tpu.memory_space<vmem>>, vector<1x8x128xf32>
    %258 = vector.shape_cast %257 : vector<1x8x128xf32> to vector<8x128xf32>
    %259 = vector.shape_cast %256 : vector<8x128xf32> to vector<1x8x128xf32>
    tpu.vector_store %arg7[%c0_148, %c0_149, %c0_150], %259 {strides = array<i32>} : memref<1x8x128xf32, #tpu.memory_space<vmem>>, vector<1x8x128xf32>,
    return
  }
  func.func @transform_0(%arg0: i32) -> (i32, i32, i32) {
    %c0_i32 = arith.constant 0 : i32
    %c0_i32_0 = arith.constant 0 : i32
    %c0_i32_1 = arith.constant 0 : i32
    return %arg0, %c0_i32, %c0_i32_0 : i32, i32, i32
  }
  func.func @transform_1(%arg0: i32) -> (i32, i32, i32, i32) {
    %c0_i32 = arith.constant 0 : i32
    %c0_i32_0 = arith.constant 0 : i32
    %c0_i32_1 = arith.constant 0 : i32
    %c0_i32_2 = arith.constant 0 : i32
    return %arg0, %c0_i32, %c0_i32_0, %c0_i32_1 : i32, i32, i32, i32
  }
  func.func @transform_2(%arg0: i32) -> (i32, i32, i32) {
    %c0_i32 = arith.constant 0 : i32
    %c0_i32_0 = arith.constant 0 : i32
    %c0_i32_1 = arith.constant 0 : i32
    return %arg0, %c0_i32, %c0_i32_0 : i32, i32, i32
  }
  func.func @transform_3(%arg0: i32) -> (i32, i32, i32) {
    %c0_i32 = arith.constant 0 : i32
    %c0_i32_0 = arith.constant 0 : i32
    %c0_i32_1 = arith.constant 0 : i32
    return %arg0, %c0_i32, %c0_i32_0 : i32, i32, i32
  }
  func.func @transform_4(%arg0: i32) -> (i32, i32, i32) {
    %c0_i32 = arith.constant 0 : i32
    %c0_i32_0 = arith.constant 0 : i32
    %c0_i32_1 = arith.constant 0 : i32
    return %arg0, %c0_i32, %c0_i32_0 : i32, i32, i32
  }
  func.func @transform_5(%arg0: i32) -> (i32, i32, i32, i32) {
    %c0_i32 = arith.constant 0 : i32
    %c0_i32_0 = arith.constant 0 : i32
    %c0_i32_1 = arith.constant 0 : i32
    %c0_i32_2 = arith.constant 0 : i32
    return %arg0, %c0_i32, %c0_i32_0, %c0_i32_1 : i32, i32, i32, i32
  }
  func.func @transform_6(%arg0: i32) -> (i32, i32, i32) {
    %c0_i32 = arith.constant 0 : i32
    %c0_i32_0 = arith.constant 0 : i32
    %c0_i32_1 = arith.constant 0 : i32
    return %arg0, %c0_i32, %c0_i32_0 : i32, i32, i32
  }
}

</mosaic_0001>

<bundles_post_ra>
// kernel: tpu_custom_call.1
= control target key start
LH: loop header
LB: loop body
LE: loop exit
PB: predicated region body
PF: predicated region fallthrough
CT: control target
= control target key end

     0   :  { %s3121_s0 = inlined_call_operand.vmem [shape: s32[2,8,1], index: 0, kind: input, shape index: {}]   ;;  %s3122_s1 = inlined_call_operand.hbm [shape: bf16[2,8,8,128], index: 1, kind: input, shape index: {}]   ;;  %s3123_s2 = inlined_call_operand.hbm [shape: bf16[2,128,128], index: 2, kind: input, shape index: {}]   ;;  %s3124_s3 = inlined_call_operand.hbm [shape: bf16[2,128,128], index: 3, kind: input, shape index: {}]   ;;  %s3125_s4 = inlined_call_operand.vmem [shape: f32[2,1,128], index: 4, kind: input, shape index: {}]   ;;  %s3126_s5 = inlined_call_operand.hbm [shape: bf16[2,8,8,128], index: 5, kind: output, shape index: {0}]   ;;  %s3127_s6 = inlined_call_operand.hbm [shape: f32[2,8,128], index: 6, kind: output, shape index: {1}]  }
   0x1   :  { %3138 = sst [smem:[#allocation20_spill]] %s3123_s2 }
   0x2   :  { %12 = vsyncpa [#allocation5], 0 }
   0x3   :  { %14 = vsyncpa [#allocation5 + $0x1], 0 }
   0x4   :  { %15 = vsyncpa [#allocation8], 0 }
   0x5   :  { %17 = vsyncpa [#allocation8 + $0x1], 0 }
   0x6   :  { %18 = vsyncpa [#allocation6], 0 }
   0x7   :  { %20 = vsyncpa [#allocation6 + $0x1], 0 }
   0x8   :  { %21 = vsyncpa [#allocation12], 0 }
   0x9   :  { %23 = vsyncpa [#allocation12 + $0x1], 0  ;;  %s2612_s21 = smov 0   ;;  %s2614_s22 = smov 0  }
   0xa   :  { %s2616_s23 = smov 0   ;;  %s2618_s24 = smov 0  }
   0xb LB: > { %3139 = sst [smem:[#allocation17_spill]] %s2558_s23  ;;  %s2633_s25 = sadd.s32 4294967295, %s2562_s24   ;;  %s2562_s24 = sphi %s2618_s24, %s3157_s24   ;;  %s2558_s23 = sphi %s2616_s23, %s3159_s23   ;;  %s2554_s22 = sphi %s2614_s22, %s3161_s22   ;;  %s2550_s21 = sphi %s2612_s21, %s3160_s21  }
   0xc   : > { %s1817_s26 = sadd.s32 4294967294, %s2562_s24   ;;  %s2637_s27 = sadd.s32 1, %s2562_s24  }
   0xd   : > { %3140 = sst [smem:[#allocation18_spill]] %s2637_s27  ;;  %s62_s28 = sadd.s32 1, %s2558_s23 }
   0xe   : > { %s59_s29 = ssub.s32 %s2562_s24, %s2637_s27  ;;  %p69_p0 = scmp.ne.s32.totalorder %s2558_s23, %s2554_s22 }
   0xf   : > { %p60_p1 = scmp.eq.s32.totalorder %s59_s29, 0  ;;  %p70_p2 = scmp.eq.s32.totalorder %s2562_s24, 0 }
  0x10   : > { %p75_p3 = scmp.ne.s32.totalorder %s2554_s22, %s2550_s21  ;;  %p76_p4 = scmp.eq.s32.totalorder %s2633_s25, 0 }
  0x11   : > { %s2649_s30 = scalar_select %p60_p1, %s2558_s23, %s62_s28  }
  0x12   : > { %p71_p5 = por %p70_p2, %p69_p0  ;;  %p2651_p6 = por %p76_p4, %p75_p3 }
  0x13   : > { %3141 = sst [smem:[#allocation19_spill]] %s2649_s30  ;;  %p177_p7 = scmp.eq.s32.totalorder %s2633_s25, 1 }
  0x14   : > { %s3142_s7 = scalar_select %p2651_p6, 1, 0 }
  0x15   : > { %p183_p8 = scmp.eq.s32.totalorder %s1817_s26, 1  ;;  %p2234_p10 = scmp.lt.s32.totalorder %s2562_s24, 2 }
  0x16   : > { %p2658_p11 = por %p177_p7, %p69_p0  ;;  %s2667_s10 = sand.u32 1, %s2558_s23  }
  0x17   : > { %p2662_p12 = por %p183_p8, %p75_p3  ;;  %p2669_p13 = pnand %p2234_p10, %p71_p5 }
  0x18   : > { %s3143_s8 = scalar_select %p2658_p11, 1, 0 }
  0x19   : > { %s3144_s9 = scalar_select %p2662_p12, 1, 0 }
  0x1a   : > { %s257_s12 = sand.u32 1, %s2562_s24   ;;  %s3128_s13 = sshll.u32 %s2667_s10, 6 }
  0x1b   : > { %s1936_s14 = sshll.u32 %s2562_s24, 10  ;;  %s3146_s2 = sld [smem:[#allocation20_spill]] }
  0x1c   : > { %s261_s18 = scalar_lea.vmem [#allocation7], %s3128_s13  ;;  %s2687_s20 = scalar_lea.sflag [#allocation8], %s257_s12 }
  0x1d   : > { %s268_s19 = sshll.u32 %s261_s18, 4  ;;  %p2693_p1 = pneg %p2669_p13  ;;  %s2685_s19 = int_to_ptr.vmem [resolvable:$true] %s268_s19 }
  0x21   : > { %s2681_s17 = scalar_lea.hbm %s3146_s2, %s1936_s14  ;;  %s2375_s16 = scalar_lea.hbm %s3146_s2, 2048 }
  0x22   : > { %s2370_s26 = scalar_lea.hbm %s2681_s17, 1024  ;;  %p2376_p4 = scmp.lt.u32.totalorder %s2681_s17, %s3146_s2 }
  0x23   : > { %p2371_p0 = scmp.ne.s32.totalorder %s2681_s17, %s2370_s26  ;;  %p2377_p5 = scmp.lt.u32.totalorder %s2375_s16, %s2370_s26 }
  0x24   : > { %p2379_p8 = scmp.lt.u32.totalorder %s2370_s26, %s2681_s17 }
  0x25   : > { %p2373_p2 = pnand %p2693_p1, %p2371_p0  ;;  %p2378_p7 = por %p2377_p5, %p2376_p4 }
  0x27   : > { %p2374_p3 = pneg %p2373_p2  ;;  %p2380_p10 = por %p2379_p8, %p2378_p7 }
  0x29   : > { %p2381_p9 = pnand %p2380_p10, %p2374_p3 }
  0x2b   : > { %2384 = shalt.err (!%p2381_p9)
}
  0x2c   : > { %s2385_s12 = scalar_lea.vmem %s2685_s19, 1024  ;;  %s2564_s29 = smov [#allocation7]  }
  0x2d   : > { %p2386_p0 = scmp.ne.s32.totalorder %s2685_s19, %s2385_s12  ;;  %s2390_s15 = sshll.u32 %s2564_s29, 4  ;;  %s2391_s15 = int_to_ptr.vmem [resolvable:$false] %s2390_s15 }
  0x2e   : > { %s2392_s13 = scalar_lea.vmem %s2391_s15, 2048  ;;  %p2393_p11 = scmp.lt.s32.totalorder %s2685_s19, %s2391_s15 }
  0x2f   : > { %p2388_p2 = pnand %p2386_p0, %p2693_p1  ;;  %p2394_p6 = scmp.lt.s32.totalorder %s2392_s13, %s2385_s12 }
  0x31   : > { %p2389_p12 = pneg %p2388_p2  ;;  %p2395_p4 = por %p2394_p6, %p2393_p11 }
  0x33   : > { %p2396_p5 = pnand %p2395_p4, %p2389_p12 }
  0x35   : > { %2399 = shalt.err (!%p2396_p5)
}
  0x36   : > { %s3134_s26 = smov 64   ;;  %s3136_s16 = smov 4  }
  0x37   : > { %2223 = dma.hbm_to_vmem [thread:$0]  (!%p2669_p13), %s2681_s17, 1024, %s2685_s19, %s2687_s20, %s3134_s26, %s3134_s26, %s3136_s16  }
  0x38   : > { %s2725_s29 = scalar_lea.hbm %s3124_s3, %s1936_s14  ;;  %s3148_s15 = sshll.u32 %s2667_s10, 6 }
  0x39   : > { %s282_s13 = scalar_lea.vmem [#allocation9], %s3148_s15  ;;  %p1829_p6 = scmp.ge.s32.totalorder %s2562_s24, 1 }
  0x3a   : > { %s289_s2 = sshll.u32 %s282_s13, 4  ;;  %p303_p9 = scmp.lt.s32.totalorder %s2562_s24, 3  ;;  %s2729_s2 = int_to_ptr.vmem [resolvable:$true] %s289_s2 }
  0x3b   : > { %s1820_s30 = sshll.u32 %s2667_s10, 5  ;;  %s1935_s23 = sshll.u32 %s2562_s24, 9 }
  0x3c   : > { %p2735_p11 = pnand %p1829_p6, %p303_p9  ;;  %s2742_s18 = scalar_lea.hbm %s3122_s1, %s1935_s23 }
  0x3d   : > { %s240_s14 = scalar_lea.vmem [#allocation4], %s1820_s30  ;;  %s237_s15 = scalar_lea.sflag [#allocation5], %s2667_s10 }
  0x3e   : > { %s3149_s27 = scalar_select %p2735_p11, 1, 0 }
  0x3f   : > { %s247_s12 = sshll.u32 %s240_s14, 4  ;;  %s2400_s13 = scalar_lea.hbm %s2742_s18, 512  ;;  %s2744_s12 = int_to_ptr.vmem [resolvable:$true] %s247_s12 }
  0x40   : > { %p2401_p12 = scmp.ne.s32.totalorder %s2742_s18, %s2400_s13  ;;  %s2405_s17 = scalar_lea.hbm %s3122_s1, 1024 }
  0x41   : > { %p2406_p8 = scmp.lt.u32.totalorder %s2742_s18, %s3122_s1  ;;  %p2407_p10 = scmp.lt.u32.totalorder %s2405_s17, %s2400_s13 }
  0x42   : > { %p2403_p3 = pnand %p2401_p12, %p2693_p1  ;;  %p2409_p2 = scmp.lt.u32.totalorder %s2400_s13, %s2742_s18 }
  0x43   : > { %p2408_p0 = por %p2407_p10, %p2406_p8 }
  0x44   : > { %p2404_p7 = pneg %p2403_p3 }
  0x45   : > { %p2410_p4 = por %p2409_p2, %p2408_p0 }
  0x47   : > { %p2411_p5 = pnand %p2410_p4, %p2404_p7 }
  0x49   : > { %2414 = shalt.err (!%p2411_p5)
}
  0x4a   : > { %s2415_s30 = scalar_lea.vmem %s2744_s12, 512  ;;  %s2567_s26 = smov [#allocation4]  }
  0x4b   : > { %p2416_p6 = scmp.ne.s32.totalorder %s2744_s12, %s2415_s30  ;;  %s2420_s16 = sshll.u32 %s2567_s26, 4  ;;  %s2421_s16 = int_to_ptr.vmem [resolvable:$false] %s2420_s16 }
  0x4c   : > { %s2422_s14 = scalar_lea.vmem %s2421_s16, 1024  ;;  %p2423_p3 = scmp.lt.s32.totalorder %s2744_s12, %s2421_s16 }
  0x4d   : > { %p2418_p9 = pnand %p2416_p6, %p2693_p1  ;;  %p2424_p11 = scmp.lt.s32.totalorder %s2422_s14, %s2415_s30 }
  0x4f   : > { %p2419_p12 = pneg %p2418_p9  ;;  %p2425_p8 = por %p2424_p11, %p2423_p3 }
  0x51   : > { %p2426_p10 = pnand %p2425_p8, %p2419_p12 }
  0x53   : > { %2429 = shalt.err (!%p2426_p10)
}
  0x54   : > { %s3150_s13 = smov 4   ;;  %s3151_s17 = smov 64  }
  0x55   : > { %2220 = dma.hbm_to_vmem [thread:$0]  (!%p2669_p13), %s2742_s18, 512, %s2744_s12, %s237_s15, %s3151_s17, %s3151_s17, %s3150_s13  }
  0x56   : > { %s2430_s23 = scalar_lea.hbm %s2725_s29, 1024  ;;  %s2435_s26 = scalar_lea.hbm %s3124_s3, 2048 }
  0x57   : > { %p2431_p7 = scmp.ne.s32.totalorder %s2725_s29, %s2430_s23  ;;  %p2436_p2 = scmp.lt.u32.totalorder %s2725_s29, %s3124_s3 }
  0x58   : > { %p2437_p4 = scmp.lt.u32.totalorder %s2435_s26, %s2430_s23  ;;  %p2439_p6 = scmp.lt.u32.totalorder %s2430_s23, %s2725_s29 }
  0x59   : > { %p2433_p11 = pnand %p2431_p7, %p2693_p1 }
  0x5a   : > { %p2438_p5 = por %p2437_p4, %p2436_p2 }
  0x5b   : > { %p2434_p0 = pneg %p2433_p11 }
  0x5c   : > { %p2440_p9 = por %p2439_p6, %p2438_p5 }
  0x5e   : > { %p2441_p12 = pnand %p2440_p9, %p2434_p0 }
  0x60   : > { %2444 = shalt.err (!%p2441_p12)
}
  0x61   : > { %s2445_s10 = scalar_lea.vmem %s2729_s2, 1024  ;;  %s2568_s18 = smov [#allocation9]  }
  0x62   : > { %p2446_p3 = scmp.ne.s32.totalorder %s2729_s2, %s2445_s10  ;;  %s2450_s12 = sshll.u32 %s2568_s18, 4  ;;  %s2451_s12 = int_to_ptr.vmem [resolvable:$false] %s2450_s12 }
  0x63   : > { %s2452_s15 = scalar_lea.vmem %s2451_s12, 2048  ;;  %p2453_p7 = scmp.lt.s32.totalorder %s2729_s2, %s2451_s12 }
  0x64   : > { %p2448_p8 = pnand %p2446_p3, %p2693_p1  ;;  %p2454_p11 = scmp.lt.s32.totalorder %s2452_s15, %s2445_s10 }
  0x66   : > { %p2449_p10 = pneg %p2448_p8  ;;  %p2455_p2 = por %p2454_p11, %p2453_p7 }
  0x68   : > { %p2456_p4 = pnand %p2455_p2, %p2449_p10 }
  0x6a   : > { %2459 = shalt.err (!%p2456_p4)
}
  0x6b   : > { %2226 = dma.hbm_to_vmem [thread:$0]  (!%p2669_p13), %s2725_s29, 1024, %s2729_s2, %s2687_s20, %s3151_s17, %s3151_s17, %s3150_s13  }
  0x6c   : > { %p3152_p1 = scmp.ne.s32.totalorder %s3149_s27, 0 }
  0x6d   : > { %s2801_s28 = sand.u32 (!%p3152_p1), 1, %s2554_s22   ;;  %p3153_p0 = scmp.ne.s32.totalorder (!%p3152_p1), %s3142_s7, 0 }
  0x6e   : > { %307 = sbr.rel (%p3152_p1) target bundleno = 2043 (0x7fb), region = 40  ;;  %s1830_s23 = sshll.u32 (!%p3152_p1), %s2801_s28, 5 }
  0x6f   : > { %s310_s19 = scalar_lea.sflag (!%p3152_p1), [#allocation5], %s2801_s28  ;;  %s2807_s11 = scalar_lea.vmem (!%p3152_p1), [#allocation4], %s1830_s23 }
  0x75   : > { %2533 = dma.done.wait (%p3153_p0), %s310_s19, 512  }
  0x76   : > { %2535 = vsyncadd (%p3153_p0), %s310_s19, 4294966784  ;;  %s318_s2 = sand.u32 1, %s2633_s25   ;;  %s1831_s27 = sshll.u32 %s2801_s28, 6 }
  0x77   : > { %s319_s20 = scalar_lea.sflag [#allocation8], %s318_s2  ;;  %s2815_s29 = scalar_lea.vmem [#allocation7], %s1831_s27 }
  0x78   : > { %2537 = dma.done.wait (%p3153_p0), %s319_s20, 2048  }
  0x79   : > { %2539 = vsyncadd (%p3153_p0), %s319_s20, 4294965248  ;;  %v2569_v0 = vmov 0.0   ;;  %vm2570_vm0 = vmmov 0   ;;  %v2571_v1 = vmov 0   ;;  %v2278_v2 = vld [vmem:[%s2815_s29] sm:$0xff]   ;;  %s2825_s13 = scalar_lea.vmem [#allocation9], %s1831_s27 }
  0x7a   : > { %2047 = vmatprep.subr.bf16.mxu1 %v2569_v0  ;;  %2063 = vmatprep.mubr.msk.bf16.mxu1 %vm2570_vm0, %v2569_v0  ;;  %v2279_v3 = vld [vmem:[%s2825_s13] sm:$0xff]   ;;  %v2280_v4 = vld [vmem:[%s2815_s29 + $0x8] sm:$0xff]   ;;  %v2282_v6 = vld [vmem:[%s2815_s29 + $0x10] sm:$0xff]   ;;  %p382_p13 = scmp.lt.s32.totalorder %s2633_s25, 1  ;;  %v2572_v39 = vmov 0.0|0.0   ;;  %s2910_s12 = scalar_lea.vmem [#allocation10], %s1830_s23 }
  0x7b   : > { %2276 = vset.pattern.permute.xlu0 %v2571_v1  ;;  %2277 = vset.pattern.permute.xlu1 %v2571_v1  ;;  %v2281_v5 = vld [vmem:[%s2825_s13 + $0x8] sm:$0xff]   ;;  %v2283_v7 = vld [vmem:[%s2825_s13 + $0x10] sm:$0xff]   ;;  %v2284_v8 = vld [vmem:[%s2815_s29 + $0x18] sm:$0xff]   ;;  %s1834_s15 = sshll.u32 %s2801_s28, 3  ;;  %s1938_s23 = sshll.u32 %s2633_s25, 9 }
  0x7c   : > { %2023 = vmatprep.subr.bf16.mxu0 %v2278_v2  ;;  %2048 = vmatpush3.bf16.msra.mxu1 %v2279_v3  ;;  %s2837_s7 = scalar_select %p382_p13, %s2633_s25, 1  ;;  %v2285_v9 = vld [vmem:[%s2825_s13 + $0x18] sm:$0xff]   ;;  %v2286_v10 = vld [vmem:[%s2815_s29 + $0x20] sm:$0xff]   ;;  %v2288_v12 = vld [vmem:[%s2815_s29 + $0x28] sm:$0xff]  }
  0x7d   : > { %2024 = vmatpush3.bf16.msra.mxu0 %v2278_v2  ;;  %2049 = vmatprep.subr.bf16.mxu1 %v2569_v0  ;;  %v2287_v11 = vld [vmem:[%s2825_s13 + $0x20] sm:$0xff]   ;;  %v2289_v14 = vld [vmem:[%s2825_s13 + $0x28] sm:$0xff]   ;;  %v2290_v16 = vld [vmem:[%s2815_s29 + $0x30] sm:$0xff]   ;;  %s1635_s19 = sshll.u32 %s2910_s12, 4  ;;  %s3044_s27 = scalar_lea.hbm %s3126_s5, %s1938_s23  ;;  %s3047_s19 = int_to_ptr.vmem [resolvable:$true] %s1635_s19 }
  0x7e   : > { %2025 = vmatprep.subr.bf16.mxu0 %v2280_v4  ;;  %s1835_s17 = sshll.u32 %s2837_s7, 3  ;;  %v2294_v13 = vld [vmem:[%s2807_s11] sm:$0xff]   ;;  %v2291_v18 = vld [vmem:[%s2825_s13 + $0x30] sm:$0xff]   ;;  %v2292_v22 = vld [vmem:[%s2815_s29 + $0x38] sm:$0xff]   ;;  %s388_s18 = scalar_lea.vmem %s3125_s4, %s2837_s7 }
  0x7f   : > { %s385_s16 = scalar_lea.vmem %s3121_s0, %s1835_s17  ;;  %2039 = vmatprep.mubr.bf16.mxu0 %v2294_v13  ;;  %v2293_v31 = vld [vmem:[%s2825_s13 + $0x38] sm:$0xff]   ;;  %v2295_v32 = vld [vmem:[%s2807_s11 + $0x8] sm:$0xff]   ;;  %v2296_v35 = vld [vmem:[%s2825_s13] sm:$0xff]   ;;  %s1932_s20 = sshll.u32 %s2633_s25, 7 }
  0x80   : > { %2050 = vmatpush3.bf16.msra.mxu1 %v2281_v5  ;;  %v567_v15 = vld [vmem:[%s385_s16] sm:$0xff]  ;;  %v2297_v38 = vld [vmem:[%s2825_s13 + $0x8] sm:$0xff]   ;;  %v2298_v40 = vld [vmem:[%s2825_s13 + $0x10] sm:$0xff]   ;;  %s381_s29 = scalar_lea.vmem [#allocation11], %s1834_s15  ;;  %s3052_s30 = scalar_lea.hbm %s3127_s6, %s1932_s20 }
  0x81   : > { %2026 = vmatpush3.bf16.msra.mxu0 %v2280_v4  ;;  %2051 = vmatprep.subr.bf16.mxu1 %v2569_v0  ;;  %vm677_vm1 = vcmp.gt.s32.totalorder %v567_v15, 0  ;;  %vm938_vm2 = vcmp.gt.s32.totalorder %v567_v15, 2  ;;  %vm1069_vm3 = vcmp.gt.s32.totalorder %v567_v15, 3  ;;  %vm1200_vm4 = vcmp.gt.s32.totalorder %v567_v15, 4  ;;  %v2299_v41 = vld [vmem:[%s2825_s13 + $0x18] sm:$0xff]   ;;  %v2300_v42 = vld [vmem:[%s2825_s13 + $0x20] sm:$0xff]  }
  0x82   : > { %2027 = vmatprep.subr.bf16.mxu0 %v2282_v6  ;;  %v1857_v17 = vsel %vm677_vm1, 1.0, %v2569_v0  ;;  %v1876_v20 = vsel %vm938_vm2, 1.0, %v2569_v0  ;;  %v1886_v21 = vsel %vm1069_vm3, 1.0, %v2569_v0  ;;  %v1896_v23 = vsel %vm1200_vm4, 1.0, %v2569_v0  ;;  %v2301_v43 = vld [vmem:[%s2807_s11 + $0x10] sm:$0xff]   ;;  %v2302_v44 = vld [vmem:[%s2807_s11 + $0x18] sm:$0xff]  }
  0x83   : > { %682 = vperm.xlu0 %2276, %v1857_v17   ;;  %v686_v19 = vsub.f32 1.0, %v1857_v17  ;;  %vm1331_vm5 = vcmp.gt.s32.totalorder %v567_v15, 5  ;;  %vm1462_vm6 = vcmp.gt.s32.totalorder %v567_v15, 6  ;;  %vm807_vm7 = vcmp.gt.s32.totalorder %v567_v15, 1  ;;  %v2303_v45 = vld [vmem:[%s2825_s13 + $0x28] sm:$0xff]   ;;  %v2304_v46 = vld [vmem:[%s2825_s13 + $0x30] sm:$0xff]  }
  0x84   : > { %2052 = vmatpush3.bf16.msra.mxu1 %v2283_v7  ;;  %v947_v24 = vsub.f32 1.0, %v1876_v20  ;;  %v1078_v25 = vsub.f32 1.0, %v1886_v21  ;;  %v1209_v26 = vsub.f32 1.0, %v1896_v23  ;;  %v1866_v27 = vsel %vm807_vm7, 1.0, %v2569_v0  ;;  %v2305_v47 = vld [vmem:[%s2825_s13 + $0x38] sm:$0xff]   ;;  %v2306_v48 = vld [vmem:[%s2825_s13] sm:$0xff]  }
  0x85   : > { %2028 = vmatpush3.bf16.msra.mxu0 %v2282_v6  ;;  %2053 = vmatprep.subr.bf16.mxu1 %v2569_v0  ;;  %v1906_v28 = vsel %vm1331_vm5, 1.0, %v2569_v0  ;;  %v1916_v29 = vsel %vm1462_vm6, 1.0, %v2569_v0  ;;  %vm1593_vm8 = vcmp.gt.s32.totalorder %v567_v15, 7  ;;  %v816_v30 = vsub.f32 1.0, %v1866_v27  ;;  %v2307_v49 = vld [vmem:[%s2825_s13 + $0x8] sm:$0xff]   ;;  %v2308_v50 = vld [vmem:[%s2825_s13 + $0x10] sm:$0xff]  }
  0x86   : > { %2029 = vmatprep.subr.bf16.mxu0 %v2284_v8  ;;  %812 = vperm.xlu1 %2277, %v1866_v27   ;;  %v1340_v33 = vsub.f32 1.0, %v1906_v28  ;;  %v1926_v34 = vsel %vm1593_vm8, 1.0, %v2569_v0  ;;  %v1471_v36 = vsub.f32 1.0, %v1916_v29  ;;  %v2901_v51 = vld [vmem:[%s388_s18] ss:$0 sm:$0xff]  ;;  %v2311_v13 = vld [vmem:[%s2825_s13 + $0x28] sm:$0xff]  }
  0x87   : > { %689 = vperm.xlu0 %2276, %v686_v19   ;;  %v1602_v37 = vsub.f32 1.0, %v1926_v34  ;;  %v2313_v15 = vld [vmem:[%s2825_s13 + $0x38] sm:$0xff]   ;;  %v2315_v17 = vld [vmem:[%s2825_s13 + $0x8] sm:$0xff]   ;;  %s1617_s26 = scalar_lea.sflag [#allocation6], %s2801_s28  ;;  %s2460_s25 = scalar_lea.vmem %s3047_s19, 512 }
  0x88   : > { %2054 = vmatpush3.bf16.msra.mxu1 %v2285_v9  ;;  %p2461_p5 = scmp.ne.s32.totalorder %s3047_s19, %s2460_s25  ;;  %p3154_p6 = scmp.ne.s32.totalorder %s3143_s8, 0 }
  0x89   : > { %2030 = vmatpush3.bf16.msra.mxu0 %v2284_v8  ;;  %2055 = vmatprep.subr.bf16.mxu1 %v2569_v0  ;;  %s2573_s16 = smov [#allocation10]  }
  0x8a   : > { %2031 = vmatprep.subr.bf16.mxu0 %v2286_v10  ;;  %819 = vperm.xlu1 %2277, %v816_v30   ;;  %p2462_p9 = pnand %p2461_p5, %p3154_p6  ;;  %s2464_s14 = sshll.u32 %s2573_s16, 4  ;;  %s2465_s14 = int_to_ptr.vmem [resolvable:$false] %s2464_s14 }
  0x8b   : > { %943 = vperm.xlu0 %2276, %v1876_v20   ;;  %s2466_s10 = scalar_lea.vmem %s2465_s14, 1024  ;;  %p2467_p3 = scmp.lt.s32.totalorder %s3047_s19, %s2465_s14 }
  0x8c   : > { %2056 = vmatpush3.bf16.msra.mxu1 %v2287_v11  ;;  %v2309_v11 = vld [vmem:[%s2825_s13 + $0x18] sm:$0xff]   ;;  %p2463_p12 = pneg %p2462_p9  ;;  %p2468_p8 = scmp.lt.s32.totalorder %s2466_s10, %s2460_s25 }
  0x8d   : > { %2032 = vmatpush3.bf16.msra.mxu0 %v2286_v10  ;;  %2057 = vmatprep.subr.bf16.mxu1 %v2569_v0 }
  0x8e   : > { %2033 = vmatprep.subr.bf16.mxu0 %v2288_v12  ;;  %950 = vperm.xlu1 %2277, %v947_v24   ;;  %p2469_p10 = por %p2468_p8, %p2467_p3 }
  0x8f   : > { %1074 = vperm.xlu0 %2276, %v1886_v21  }
  0x90   : > { %2058 = vmatpush3.bf16.msra.mxu1 %v2289_v14  ;;  %v2312_v14 = vld [vmem:[%s2825_s13 + $0x30] sm:$0xff]   ;;  %p2470_p7 = pnand %p2469_p10, %p2463_p12 }
  0x91   : > { %2034 = vmatpush3.bf16.msra.mxu0 %v2288_v12  ;;  %2059 = vmatprep.subr.bf16.mxu1 %v2569_v0  ;;  %v2310_v12 = vld [vmem:[%s2825_s13 + $0x20] sm:$0xff]  }
  0x92   : > { %2035 = vmatprep.subr.bf16.mxu0 %v2290_v16  ;;  %1081 = vperm.xlu1 %2277, %v1078_v25  }
  0x93   : > { %1205 = vperm.xlu0 %2276, %v1896_v23  }
  0x94   : > { %2060 = vmatpush3.bf16.msra.mxu1 %v2291_v18  ;;  %v2316_v18 = vld [vmem:[%s2825_s13 + $0x10] sm:$0xff]  }
  0x95   : > { %2036 = vmatpush3.bf16.msra.mxu0 %v2290_v16  ;;  %2061 = vmatprep.subr.bf16.mxu1 %v2569_v0  ;;  %v2314_v16 = vld [vmem:[%s2825_s13] sm:$0xff]  }
  0x96   : > { %2037 = vmatprep.subr.bf16.mxu0 %v2292_v22  ;;  %1212 = vperm.xlu1 %2277, %v1209_v26  }
  0x97   : > { %1336 = vperm.xlu0 %2276, %v1906_v28  }
  0x98   : > { %2062 = vmatpush3.bf16.msra.mxu1 %v2293_v31 }
  0x99   : > { %2038 = vmatpush3.bf16.msra.mxu0 %v2292_v22  ;;  %2087 = vmatprep.subr.bf16.mxu1 %v2569_v0 }
  0x9a   : > { %2067 = vmatprep.subr.bf16.mxu0 %v2569_v0  ;;  %1343 = vperm.xlu1 %2277, %v1340_v33   ;;  %v2317_v33 = vld [vmem:[%s2825_s13 + $0x18] sm:$0xff]  }
  0x9b   : > { %2064 = vmatmul.mubr.bf16.vlgmr.msra.gmra.mrb[0].mxu1 %v2572_v39  ;;  %1467 = vperm.xlu0 %2276, %v1916_v29   ;;  %v2323_v39 = vld [vmem:[%s2825_s13 + $0x8] sm:$0xff]  }
  0x9c   : > { %2040 = vmatmul.mubr.bf16.vlgmr.msra.gmra.mrb[0].mxu0 %v2295_v32  ;;  %2103 = vmatprep.mubr.msk.bf16.mxu1 %vm2570_vm0, %v2569_v0 }
  0x9d   : > { %2068 = vmatpush3.bf16.msra.mxu0 %v2296_v35  ;;  %2043 = vmatprep.mubr.bf16.mxu0 %v2301_v43  ;;  %v2319_v35 = vld [vmem:[%s2825_s13 + $0x28] sm:$0xff]  }
  0x9e   : > { %2069 = vmatprep.subr.bf16.mxu0 %v2569_v0  ;;  %1474 = vperm.xlu1 %2277, %v1471_v36   ;;  %v2320_v36 = vld [vmem:[%s2825_s13 + $0x30] sm:$0xff]  }
  0x9f   : > { %1598 = vperm.xlu0 %2276, %v1926_v34   ;;  %2088 = vmatpush3.bf16.msra.mxu1 %v2306_v48  ;;  %v2318_v34 = vld [vmem:[%s2825_s13 + $0x20] sm:$0xff]  }
  0xa0   : > { %2089 = vmatprep.subr.bf16.mxu1 %v2569_v0 }
  0xa1   : > { %2070 = vmatpush3.bf16.msra.mxu0 %v2297_v38  ;;  %v2322_v38 = vld [vmem:[%s2825_s13] sm:$0xff]  }
  0xa2   : > { %2071 = vmatprep.subr.bf16.mxu0 %v2569_v0  ;;  %1605 = vperm.xlu1 %2277, %v1602_v37   ;;  %v2321_v37 = vld [vmem:[%s2825_s13 + $0x38] sm:$0xff]  }
  0xa3   : > { %2090 = vmatpush3.bf16.msra.mxu1 %v2307_v49 }
  0xa4   : > { %2044 = vmatmul.mubr.bf16.gmra.mrb[4].mxu0 %v2302_v44  ;;  %2091 = vmatprep.subr.bf16.mxu1 %v2569_v0 }
  0xa5   : > { %2072 = vmatpush3.bf16.msra.mxu0 %v2298_v40  ;;  %2083 = vmatprep.mubr.msk.bf16.mxu0 %vm2570_vm0, %v2569_v0  ;;  %v2324_v40 = vld [vmem:[%s2825_s13 + $0x10] sm:$0xff]  }
  0xa6   : > { %2073 = vmatprep.subr.bf16.mxu0 %v2569_v0 }
  0xa7   : > { %2092 = vmatpush3.bf16.msra.mxu1 %v2308_v50 }
  0xa8   : > { %2093 = vmatprep.subr.bf16.mxu1 %v2569_v0 }
  0xa9   : > { %2074 = vmatpush3.bf16.msra.mxu0 %v2299_v41 }
  0xaa   : > { %2075 = vmatprep.subr.bf16.mxu0 %v2569_v0 }
  0xab   : > { %2094 = vmatpush3.bf16.msra.mxu1 %v2309_v11 }
  0xac   : > { %2095 = vmatprep.subr.bf16.mxu1 %v2569_v0 }
  0xad   : > { %2076 = vmatpush3.bf16.msra.mxu0 %v2300_v42 }
  0xae   : > { %2077 = vmatprep.subr.bf16.mxu0 %v2569_v0 }
  0xaf   : > { %2096 = vmatpush3.bf16.msra.mxu1 %v2310_v12 }
  0xb0   : > { %2097 = vmatprep.subr.bf16.mxu1 %v2569_v0 }
  0xb1   : > { %2078 = vmatpush3.bf16.msra.mxu0 %v2303_v45 }
  0xb2   : > { %2079 = vmatprep.subr.bf16.mxu0 %v2569_v0 }
  0xb3   : > { %2098 = vmatpush3.bf16.msra.mxu1 %v2311_v13 }
  0xb4   : > { %2099 = vmatprep.subr.bf16.mxu1 %v2569_v0 }
  0xb5   : > { %2080 = vmatpush3.bf16.msra.mxu0 %v2304_v46 }
  0xb6   : > { %2081 = vmatprep.subr.bf16.mxu0 %v2569_v0 }
  0xb7   : > { %2100 = vmatpush3.bf16.msra.mxu1 %v2312_v14 }
  0xb8   : > { %2101 = vmatprep.subr.bf16.mxu1 %v2569_v0 }
  0xb9   : > { %2082 = vmatpush3.bf16.msra.mxu0 %v2305_v47 }
  0xba   : > { %2107 = vmatprep.subr.bf16.mxu0 %v2569_v0 }
  0xbb   : > { %2102 = vmatpush3.bf16.msra.mxu1 %v2313_v15 }
  0xbc   : > { %2127 = vmatprep.subr.bf16.mxu1 %v2569_v0 }
 0x102   : > { %v683_v62 = vpop.permute.xlu0 %682 }
 0x105   : > { %v813_v25 = vpop.permute.xlu1 %812 }
 0x106   : > { %v690_v1 = vpop.permute.xlu0 %689 }
 0x107   : > { %v692_v2 = vmul.f32 0.0, %v690_v1  ;;  %v2332_v1 = vld [vmem:[%s2825_s13 + $0x10] sm:$0xff]  }
 0x109   : > { %v820_v26 = vpop.permute.xlu1 %819 }
 0x10a   : > { %v944_v48 = vpop.permute.xlu0 %943 }
 0x10d   : > { %v951_v49 = vpop.permute.xlu1 %950 }
 0x10e   : > { %v1075_v13 = vpop.permute.xlu0 %1074 }
 0x111   : > { %v1082_v14 = vpop.permute.xlu1 %1081 }
 0x16e   : > { %v669_v52 = vpop.f32.mrb[0].mxu1 }
 0x16f   : > { %v2903_v53 = vpop.f32.mrb[0].mxu0  ;;  %v2065_v55 = vpop.f32.mrb[1].mxu1 }
 0x170   : > { %v527_v54 = vpop.f32.mrb[1].mxu0  ;;  %v672_v58 = vpop.f32.mrb[2].mxu1  ;;  %v536_v41 = vadd.f32 %v2903_v53, %v2901_v51 }
 0x171   : > { %v528_v56 = vadd.f32 %v2901_v51, %v527_v54  ;;  %v2906_v57 = vpop.f32.mrb[2].mxu0  ;;  %v2066_v60 = vpop.f32.mrb[3].mxu1  ;;  %v2326_v58 = vld [vmem:[%s2825_s13 + $0x20] sm:$0xff]  }
 0x172   : > { %v530_v59 = vpop.f32.mrb[3].mxu0  ;;  %v2328_v60 = vld [vmem:[%s2825_s13 + $0x30] sm:$0xff]  }
 0x173   : > { %v675_v61 = vadd.f32 %v669_v52, %v528_v56  ;;  %v531_v19 = vadd.f32 %v2901_v51, %v530_v59  ;;  %v2325_v56 = vld [vmem:[%s2825_s13 + $0x18] sm:$0xff]   ;;  %v2327_v59 = vld [vmem:[%s2825_s13 + $0x28] sm:$0xff]  }
 0x175   : > { %2354 = vtanh.f32 %v675_v61  ;;  %v2329_v61 = vld [vmem:[%s2825_s13 + $0x38] sm:$0xff]  }
 0x177   : > { %v2915_v7 = vpop.f32.mrb[4].mxu0 }
 0x178   : > { %v2917_v8 = vpop.f32.mrb[5].mxu0 }
 0x179   : > { %v2919_v9 = vpop.f32.mrb[6].mxu0 }
 0x17a   : > { %v2921_v10 = vpop.f32.mrb[7].mxu0 }
 0x17f   : > { %v2355_v63 = vpop.eup %2354 }
 0x180   : > { %v685_v3 = vmul.f32 %v2355_v63, %v683_v62  ;;  %v2330_v62 = vld [vmem:[%s2825_s13] sm:$0xff]   ;;  %v2331_v63 = vld [vmem:[%s2825_s13 + $0x8] sm:$0xff]  }
 0x182   : > { %v693_v4 = vadd.f32 %v692_v2, %v685_v3  ;;  %v695_v5 = vpack.c.bf16 %v685_v3, %v685_v3  ;;  %v539_v2 = vadd.f32 %v2906_v57, %v2901_v51 }
 0x184   : > { %696 = vst [vmem:[%s2910_s12] sm:$0xf] %v695_v5  ;;  %v700_v6 = vpack.c.bf16 %v693_v4, %v693_v4  ;;  %v822_v28 = vmul.f32 %v820_v26, %v693_v4  ;;  %v2340_v26 = vld [vmem:[%s2825_s13 + $0x10] sm:$0xff]  }
 0x186   : > { %2084 = vmatmul.mubr.bf16.vlgmr.msra.gmra.mrb[8].mxu0 %v700_v6 }
 0x187   : > { %2123 = vmatprep.mubr.msk.bf16.mxu0 %vm2570_vm0, %v2569_v0  ;;  %2108 = vmatpush3.bf16.msra.mxu0 %v2314_v16 }
 0x188   : > { %2109 = vmatprep.subr.bf16.mxu0 %v2569_v0 }
 0x18b   : > { %2110 = vmatpush3.bf16.msra.mxu0 %v2315_v17 }
 0x18c   : > { %2111 = vmatprep.subr.bf16.mxu0 %v2569_v0 }
 0x18f   : > { %2112 = vmatpush3.bf16.msra.mxu0 %v2316_v18 }
 0x190   : > { %2113 = vmatprep.subr.bf16.mxu0 %v2569_v0 }
 0x193   : > { %2114 = vmatpush3.bf16.msra.mxu0 %v2317_v33 }
 0x194   : > { %2115 = vmatprep.subr.bf16.mxu0 %v2569_v0 }
 0x197   : > { %2116 = vmatpush3.bf16.msra.mxu0 %v2318_v34  ;;  %v1206_v34 = vpop.permute.xlu0 %1205 }
 0x198   : > { %2117 = vmatprep.subr.bf16.mxu0 %v2569_v0 }
 0x19b   : > { %2118 = vmatpush3.bf16.msra.mxu0 %v2319_v35  ;;  %v1213_v35 = vpop.permute.xlu1 %1212 }
 0x19c   : > { %2119 = vmatprep.subr.bf16.mxu0 %v2569_v0 }
 0x19f   : > { %2120 = vmatpush3.bf16.msra.mxu0 %v2320_v36 }
 0x1a0   : > { %2121 = vmatprep.subr.bf16.mxu0 %v2569_v0 }
 0x1a3   : > { %2122 = vmatpush3.bf16.msra.mxu0 %v2321_v37 }
 0x1a4   : > { %2147 = vmatprep.subr.bf16.mxu0 %v2569_v0 }
 0x259   : > { %v799_v20 = vpop.f32.mrb[8].mxu0 }
 0x25a   : > { %v805_v21 = vadd.f32 %v799_v20, %v531_v19  ;;  %v2085_v22 = vpop.f32.mrb[9].mxu0  ;;  %v2333_v19 = vld [vmem:[%s2825_s13 + $0x18] sm:$0xff]   ;;  %v2334_v20 = vld [vmem:[%s2825_s13 + $0x20] sm:$0xff]  }
 0x25b   : > { %v802_v23 = vpop.f32.mrb[10].mxu0  ;;  %v2336_v22 = vld [vmem:[%s2825_s13 + $0x30] sm:$0xff]  }
 0x25c   : > { %2356 = vtanh.f32 %v805_v21  ;;  %v2086_v24 = vpop.f32.mrb[11].mxu0  ;;  %v2335_v21 = vld [vmem:[%s2825_s13 + $0x28] sm:$0xff]   ;;  %v2337_v23 = vld [vmem:[%s2825_s13 + $0x38] sm:$0xff]  }
 0x25d   : > { %v2338_v24 = vld [vmem:[%s2825_s13] sm:$0xff]  }
 0x266   : > { %v2357_v27 = vpop.eup %2356 }
 0x267   : > { %v815_v29 = vmul.f32 %v2357_v27, %v813_v25  ;;  %v2339_v25 = vld [vmem:[%s2825_s13 + $0x8] sm:$0xff]   ;;  %v544_v27 = vadd.f32 %v2901_v51, %v2917_v8 }
 0x269   : > { %v823_v30 = vadd.f32 %v822_v28, %v815_v29  ;;  %v825_v31 = vpack.c.bf16 %v815_v29, %v815_v29 }
 0x26b   : > { %1867 = vst [vmem:[%s2910_s12 + $0x4] sm:$0xf] %v825_v31  ;;  %v831_v32 = vpack.c.bf16 %v823_v30, %v823_v30  ;;  %v953_v52 = vmul.f32 %v951_v49, %v823_v30 }
 0x26d   : > { %2104 = vmatmul.mubr.bf16.vlgmr.msra.gmra.mrb[4].mxu1 %v831_v32 }
 0x26e   : > { %2143 = vmatprep.mubr.msk.bf16.mxu1 %vm2570_vm0, %v2569_v0  ;;  %2128 = vmatpush3.bf16.msra.mxu1 %v2322_v38 }
 0x26f   : > { %2129 = vmatprep.subr.bf16.mxu1 %v2569_v0 }
 0x272   : > { %2130 = vmatpush3.bf16.msra.mxu1 %v2323_v39 }
 0x273   : > { %2131 = vmatprep.subr.bf16.mxu1 %v2569_v0 }
 0x276   : > { %2132 = vmatpush3.bf16.msra.mxu1 %v2324_v40  ;;  %v2341_v40 = vld [vmem:[%s2825_s13 + $0x18] sm:$0xff]  }
 0x277   : > { %2133 = vmatprep.subr.bf16.mxu1 %v2569_v0 }
 0x27a   : > { %2134 = vmatpush3.bf16.msra.mxu1 %v2325_v56  ;;  %v1337_v56 = vpop.permute.xlu0 %1336 }
 0x27b   : > { %2135 = vmatprep.subr.bf16.mxu1 %v2569_v0 }
 0x27e   : > { %2136 = vmatpush3.bf16.msra.mxu1 %v2326_v58  ;;  %v1344_v58 = vpop.permute.xlu1 %1343 }
 0x27f   : > { %2137 = vmatprep.subr.bf16.mxu1 %v2569_v0 }
 0x282   : > { %2138 = vmatpush3.bf16.msra.mxu1 %v2327_v59 }
 0x283   : > { %2139 = vmatprep.subr.bf16.mxu1 %v2569_v0 }
 0x286   : > { %2140 = vmatpush3.bf16.msra.mxu1 %v2328_v60 }
 0x287   : > { %2141 = vmatprep.subr.bf16.mxu1 %v2569_v0 }
 0x28a   : > { %2142 = vmatpush3.bf16.msra.mxu1 %v2329_v61 }
 0x28b   : > { %2167 = vmatprep.subr.bf16.mxu1 %v2569_v0 }
 0x340   : > { %v930_v42 = vpop.f32.mrb[4].mxu1 }
 0x341   : > { %v936_v43 = vadd.f32 %v930_v42, %v536_v41  ;;  %v2105_v44 = vpop.f32.mrb[5].mxu1  ;;  %v2342_v41 = vld [vmem:[%s2825_s13 + $0x20] sm:$0xff]   ;;  %v2343_v42 = vld [vmem:[%s2825_s13 + $0x28] sm:$0xff]  }
 0x342   : > { %v933_v45 = vpop.f32.mrb[6].mxu1  ;;  %v2345_v44 = vld [vmem:[%s2825_s13 + $0x38] sm:$0xff]  }
 0x343   : > { %2358 = vtanh.f32 %v936_v43  ;;  %v2106_v46 = vpop.f32.mrb[7].mxu1  ;;  %v2344_v43 = vld [vmem:[%s2825_s13 + $0x30] sm:$0xff]   ;;  %v2346_v45 = vld [vmem:[%s2825_s13] sm:$0xff]  }
 0x344   : > { %v2347_v46 = vld [vmem:[%s2825_s13 + $0x8] sm:$0xff]  }
 0x34d   : > { %v2359_v47 = vpop.eup %2358 }
 0x34e   : > { %v946_v50 = vmul.f32 %v2359_v47, %v944_v48  ;;  %v2348_v47 = vld [vmem:[%s2825_s13 + $0x10] sm:$0xff]   ;;  %v547_v48 = vadd.f32 %v2901_v51, %v2921_v10 }
 0x350   : > { %v954_v54 = vadd.f32 %v953_v52, %v946_v50  ;;  %v956_v55 = vpack.c.bf16 %v946_v50, %v946_v50 }
 0x352   : > { %1877 = vst [vmem:[%s2910_s12 + $0x8] sm:$0xf] %v956_v55  ;;  %v962_v53 = vpack.c.bf16 %v954_v54, %v954_v54  ;;  %v1084_v16 = vmul.f32 %v1082_v14, %v954_v54 }
 0x354   : > { %2124 = vmatmul.mubr.bf16.vlgmr.msra.gmra.mrb[12].mxu0 %v962_v53 }
 0x355   : > { %2163 = vmatprep.mubr.msk.bf16.mxu0 %vm2570_vm0, %v2569_v0  ;;  %2148 = vmatpush3.bf16.msra.mxu0 %v2330_v62 }
 0x356   : > { %2149 = vmatprep.subr.bf16.mxu0 %v2569_v0 }
 0x359   : > { %2150 = vmatpush3.bf16.msra.mxu0 %v2331_v63  ;;  %v2349_v63 = vld [vmem:[%s2825_s13 + $0x18] sm:$0xff]  }
 0x35a   : > { %2151 = vmatprep.subr.bf16.mxu0 %v2569_v0 }
 0x35d   : > { %2152 = vmatpush3.bf16.msra.mxu0 %v2332_v1  ;;  %v2350_v1 = vld [vmem:[%s2825_s13 + $0x20] sm:$0xff]  }
 0x35e   : > { %2153 = vmatprep.subr.bf16.mxu0 %v2569_v0 }
 0x361   : > { %2154 = vmatpush3.bf16.msra.mxu0 %v2333_v19 }
 0x362   : > { %2155 = vmatprep.subr.bf16.mxu0 %v2569_v0 }
 0x365   : > { %2156 = vmatpush3.bf16.msra.mxu0 %v2334_v20 }
 0x366   : > { %2157 = vmatprep.subr.bf16.mxu0 %v2569_v0 }
 0x369   : > { %2158 = vmatpush3.bf16.msra.mxu0 %v2335_v21 }
 0x36a   : > { %2159 = vmatprep.subr.bf16.mxu0 %v2569_v0 }
 0x36d   : > { %2160 = vmatpush3.bf16.msra.mxu0 %v2336_v22 }
 0x36e   : > { %2161 = vmatprep.subr.bf16.mxu0 %v2569_v0 }
 0x371   : > { %2162 = vmatpush3.bf16.msra.mxu0 %v2337_v23 }
 0x372   : > { %2187 = vmatprep.subr.bf16.mxu0 %v2569_v0 }
 0x427   : > { %v1061_v3 = vpop.f32.mrb[12].mxu0 }
 0x428   : > { %v1067_v4 = vadd.f32 %v1061_v3, %v539_v2  ;;  %v2125_v5 = vpop.f32.mrb[13].mxu0  ;;  %v2351_v2 = vld [vmem:[%s2825_s13 + $0x28] sm:$0xff]   ;;  %v2352_v3 = vld [vmem:[%s2825_s13 + $0x30] sm:$0xff]  }
 0x429   : > { %v1064_v6 = vpop.f32.mrb[14].mxu0  ;;  %v552_v5 = vadd.f32 %v2915_v7, %v2901_v51  ;;  %v555_v7 = vadd.f32 %v2919_v9, %v2901_v51 }
 0x42a   : > { %2360 = vtanh.f32 %v1067_v4  ;;  %v2126_v11 = vpop.f32.mrb[15].mxu0  ;;  %v2353_v4 = vld [vmem:[%s2825_s13 + $0x38] sm:$0xff]   ;;  %s1651_s13 = sshll.u32 %s381_s29, 4  ;;  %s3054_s13 = int_to_ptr.vmem [resolvable:$true] %s1651_s13 }
 0x434   : > { %v2361_v12 = vpop.eup %2360 }
 0x435   : > { %v1077_v15 = vmul.f32 %v2361_v12, %v1075_v13 }
 0x437   : > { %v1085_v17 = vadd.f32 %v1084_v16, %v1077_v15  ;;  %v1087_v18 = vpack.c.bf16 %v1077_v15, %v1077_v15  ;;  %v1468_v16 = vpop.permute.xlu0 %1467 }
 0x439   : > { %1887 = vst [vmem:[%s2910_s12 + $0xc] sm:$0xf] %v1087_v18  ;;  %v1093_v57 = vpack.c.bf16 %v1085_v17, %v1085_v17  ;;  %v1215_v37 = vmul.f32 %v1213_v35, %v1085_v17  ;;  %v1475_v17 = vpop.permute.xlu1 %1474 }
 0x43b   : > { %2144 = vmatmul.mubr.bf16.vlgmr.msra.gmra.mrb[8].mxu1 %v1093_v57 }
 0x43c   : > { %2183 = vmatprep.mubr.msk.bf16.mxu1 %vm2570_vm0, %v2569_v0  ;;  %2168 = vmatpush3.bf16.msra.mxu1 %v2338_v24 }
 0x43d   : > { %2169 = vmatprep.subr.bf16.mxu1 %v2569_v0 }
 0x440   : > { %2170 = vmatpush3.bf16.msra.mxu1 %v2339_v25 }
 0x441   : > { %2171 = vmatprep.subr.bf16.mxu1 %v2569_v0 }
 0x444   : > { %2172 = vmatpush3.bf16.msra.mxu1 %v2340_v26 }
 0x445   : > { %2173 = vmatprep.subr.bf16.mxu1 %v2569_v0 }
 0x448   : > { %2174 = vmatpush3.bf16.msra.mxu1 %v2341_v40 }
 0x449   : > { %2175 = vmatprep.subr.bf16.mxu1 %v2569_v0 }
 0x44c   : > { %2176 = vmatpush3.bf16.msra.mxu1 %v2342_v41 }
 0x44d   : > { %2177 = vmatprep.subr.bf16.mxu1 %v2569_v0 }
 0x450   : > { %2178 = vmatpush3.bf16.msra.mxu1 %v2343_v42 }
 0x451   : > { %2179 = vmatprep.subr.bf16.mxu1 %v2569_v0 }
 0x454   : > { %2180 = vmatpush3.bf16.msra.mxu1 %v2344_v43 }
 0x455   : > { %2181 = vmatprep.subr.bf16.mxu1 %v2569_v0 }
 0x458   : > { %2182 = vmatpush3.bf16.msra.mxu1 %v2345_v44 }
 0x50e   : > { %v1192_v28 = vpop.f32.mrb[8].mxu1 }
 0x50f   : > { %v1198_v29 = vadd.f32 %v1192_v28, %v544_v27  ;;  %v2145_v30 = vpop.f32.mrb[9].mxu1  ;;  %v1599_v27 = vpop.permute.xlu0 %1598 }
 0x510   : > { %v1195_v31 = vpop.f32.mrb[10].mxu1  ;;  %v1606_v28 = vpop.permute.xlu1 %1605 }
 0x511   : > { %2362 = vtanh.f32 %v1198_v29  ;;  %v2146_v32 = vpop.f32.mrb[11].mxu1 }
 0x51b   : > { %v2363_v33 = vpop.eup %2362 }
 0x51c   : > { %v1208_v36 = vmul.f32 %v2363_v33, %v1206_v34 }
 0x51e   : > { %v1216_v38 = vadd.f32 %v1215_v37, %v1208_v36  ;;  %v1218_v39 = vpack.c.bf16 %v1208_v36, %v1208_v36 }
 0x520   : > { %1897 = vst [vmem:[%s2910_s12 + $0x10] sm:$0xf] %v1218_v39  ;;  %v1224_v8 = vpack.c.bf16 %v1216_v38, %v1216_v38  ;;  %v1346_v60 = vmul.f32 %v1344_v58, %v1216_v38 }
 0x522   : > { %2164 = vmatmul.mubr.bf16.vlgmr.msra.gmra.mrb[16].mxu0 %v1224_v8 }
 0x523   : > { %2203 = vmatprep.mubr.msk.bf16.mxu0 %vm2570_vm0, %v2569_v0  ;;  %2188 = vmatpush3.bf16.msra.mxu0 %v2346_v45 }
 0x524   : > { %2189 = vmatprep.subr.bf16.mxu0 %v2569_v0 }
 0x527   : > { %2190 = vmatpush3.bf16.msra.mxu0 %v2347_v46 }
 0x528   : > { %2191 = vmatprep.subr.bf16.mxu0 %v2569_v0 }
 0x52b   : > { %2192 = vmatpush3.bf16.msra.mxu0 %v2348_v47 }
 0x52c   : > { %2193 = vmatprep.subr.bf16.mxu0 %v2569_v0 }
 0x52f   : > { %2194 = vmatpush3.bf16.msra.mxu0 %v2349_v63 }
 0x530   : > { %2195 = vmatprep.subr.bf16.mxu0 %v2569_v0 }
 0x533   : > { %2196 = vmatpush3.bf16.msra.mxu0 %v2350_v1 }
 0x534   : > { %2197 = vmatprep.subr.bf16.mxu0 %v2569_v0 }
 0x537   : > { %2198 = vmatpush3.bf16.msra.mxu0 %v2351_v2 }
 0x538   : > { %2199 = vmatprep.subr.bf16.mxu0 %v2569_v0 }
 0x53b   : > { %2200 = vmatpush3.bf16.msra.mxu0 %v2352_v3 }
 0x53c   : > { %2201 = vmatprep.subr.bf16.mxu0 %v2569_v0 }
 0x53f   : > { %2202 = vmatpush3.bf16.msra.mxu0 %v2353_v4 }
 0x5f5   : > { %v1323_v49 = vpop.f32.mrb[16].mxu0 }
 0x5f6   : > { %v1329_v50 = vadd.f32 %v1323_v49, %v547_v48  ;;  %v2165_v52 = vpop.f32.mrb[17].mxu0 }
 0x5f7   : > { %v1326_v54 = vpop.f32.mrb[18].mxu0 }
 0x5f8   : > { %2364 = vtanh.f32 %v1329_v50  ;;  %v2166_v55 = vpop.f32.mrb[19].mxu0 }
 0x602   : > { %v2365_v53 = vpop.eup %2364 }
 0x603   : > { %v1339_v59 = vmul.f32 %v2365_v53, %v1337_v56 }
 0x605   : > { %v1347_v61 = vadd.f32 %v1346_v60, %v1339_v59  ;;  %v1349_v62 = vpack.c.bf16 %v1339_v59, %v1339_v59 }
 0x607   : > { %1907 = vst [vmem:[%s2910_s12 + $0x14] sm:$0xf] %v1349_v62  ;;  %v1355_v10 = vpack.c.bf16 %v1347_v61, %v1347_v61  ;;  %v1477_v57 = vmul.f32 %v1475_v17, %v1347_v61 }
 0x609   : > { %2184 = vmatmul.mubr.bf16.vlgmr.msra.gmra.mrb[12].mxu1 %v1355_v10 }
 0x6dc   : > { %v1454_v6 = vpop.f32.mrb[12].mxu1 }
 0x6dd   : > { %v1460_v11 = vadd.f32 %v1454_v6, %v552_v5  ;;  %v2185_v12 = vpop.f32.mrb[13].mxu1 }
 0x6de   : > { %v1457_v13 = vpop.f32.mrb[14].mxu1 }
 0x6df   : > { %2366 = vtanh.f32 %v1460_v11  ;;  %v2186_v14 = vpop.f32.mrb[15].mxu1 }
 0x6e9   : > { %v2367_v15 = vpop.eup %2366 }
 0x6ea   : > { %v1470_v18 = vmul.f32 %v2367_v15, %v1468_v16 }
 0x6ec   : > { %v1478_v0 = vadd.f32 %v1477_v57, %v1470_v18  ;;  %v1480_v19 = vpack.c.bf16 %v1470_v18, %v1470_v18 }
 0x6ee   : > { %1917 = vst [vmem:[%s2910_s12 + $0x18] sm:$0xf] %v1480_v19  ;;  %v1486_v20 = vpack.c.bf16 %v1478_v0, %v1478_v0  ;;  %v1608_v51 = vmul.f32 %v1606_v28, %v1478_v0 }
 0x6f0   : > { %2204 = vmatmul.mubr.bf16.vlgmr.msra.gmra.mrb[20].mxu0 %v1486_v20 }
 0x7c3   : > { %v1585_v21 = vpop.f32.mrb[20].mxu0 }
 0x7c4   : > { %v1591_v22 = vadd.f32 %v1585_v21, %v555_v7  ;;  %v2205_v23 = vpop.f32.mrb[21].mxu0 }
 0x7c5   : > { %v1588_v24 = vpop.f32.mrb[22].mxu0 }
 0x7c6   : > { %2368 = vtanh.f32 %v1591_v22  ;;  %v2206_v25 = vpop.f32.mrb[23].mxu0 }
 0x7d0   : > { %v2369_v26 = vpop.eup %2368 }
 0x7d1   : > { %v1601_v9 = vmul.f32 %v2369_v26, %v1599_v27 }
 0x7d3   : > { %v1611_v29 = vpack.c.bf16 %v1601_v9, %v1601_v9  ;;  %v1609_v30 = vadd.f32 %v1608_v51, %v1601_v9 }
 0x7d5   : > { %1927 = vst [vmem:[%s2910_s12 + $0x1c] sm:$0xf] %v1611_v29  ;;  %1615 = vst [vmem:[%s381_s29] sm:$0xff] %v1609_v30 }
 0x7d6   : > { %2473 = shalt.err (!%p2470_p7)
}
 0x7d7   : > { %s2474_s18 = scalar_lea.hbm %s3044_s27, 512  ;;  %s2478_s23 = scalar_lea.hbm %s3126_s5, 1024 }
 0x7d8   : > { %p2475_p11 = scmp.ne.s32.totalorder %s3044_s27, %s2474_s18  ;;  %p2479_p1 = scmp.lt.u32.totalorder %s3044_s27, %s3126_s5 }
 0x7d9   : > { %p2480_p0 = scmp.lt.u32.totalorder %s2478_s23, %s2474_s18  ;;  %p2482_p5 = scmp.lt.u32.totalorder %s2474_s18, %s3044_s27 }
 0x7da   : > { %p2476_p2 = pnand %p2475_p11, %p3154_p6 }
 0x7db   : > { %p2481_p13 = por %p2480_p0, %p2479_p1 }
 0x7dc   : > { %p2477_p4 = pneg %p2476_p2 }
 0x7dd   : > { %p2483_p9 = por %p2482_p5, %p2481_p13 }
 0x7df   : > { %p2484_p12 = pnand %p2483_p9, %p2477_p4 }
 0x7e1   : > { %2487 = shalt.err (!%p2484_p12)
}
 0x7e2   : > { %s2574_s20 = smov 64   ;;  %s2575_s29 = smov 4  }
 0x7e3   : > { %2213 = dma.vmem_to_hbm [thread:$0]  (%p3154_p6), %s3047_s19, 512, %s3044_s27, %s1617_s26, %s2574_s20, %s2574_s20, %s2575_s29  }
 0x7e4   : > { %s1622_s7 = scalar_lea.sflag [#allocation12], %s2801_s28  ;;  %s2488_s17 = scalar_lea.vmem %s3054_s13, 128 }
 0x7e5   : > { %p2489_p3 = scmp.ne.s32.totalorder %s3054_s13, %s2488_s17  ;;  %s2576_s25 = smov [#allocation11]  }
 0x7e6   : > { %s2492_s16 = sshll.u32 %s2576_s25, 4  ;;  %s2493_s16 = int_to_ptr.vmem [resolvable:$false] %s2492_s16 }
 0x7e7   : > { %p2490_p8 = pnand %p2489_p3, %p3154_p6  ;;  %s2494_s14 = scalar_lea.vmem %s2493_s16, 256 }
 0x7e8   : > { %p2495_p7 = scmp.lt.s32.totalorder %s3054_s13, %s2493_s16  ;;  %p2496_p11 = scmp.lt.s32.totalorder %s2494_s14, %s2488_s17 }
 0x7e9   : > { %p2491_p10 = pneg %p2490_p8 }
 0x7ea   : > { %p2497_p2 = por %p2496_p11, %p2495_p7 }
 0x7ec   : > { %p2498_p4 = pnand %p2497_p2, %p2491_p10 }
 0x7ee   : > { %2501 = shalt.err (!%p2498_p4)
}
 0x7ef   : > { %s2502_s28 = scalar_lea.hbm %s3052_s30, 128  ;;  %s2506_s26 = scalar_lea.hbm %s3127_s6, 256 }
 0x7f0   : > { %p2503_p1 = scmp.ne.s32.totalorder %s3052_s30, %s2502_s28  ;;  %p2507_p5 = scmp.lt.u32.totalorder %s3052_s30, %s3127_s6 }
 0x7f1   : > { %p2508_p9 = scmp.lt.u32.totalorder %s2506_s26, %s2502_s28  ;;  %p2510_p3 = scmp.lt.u32.totalorder %s2502_s28, %s3052_s30 }
 0x7f2   : > { %p2504_p0 = pnand %p2503_p1, %p3154_p6 }
 0x7f3   : > { %p2509_p12 = por %p2508_p9, %p2507_p5 }
 0x7f4   : > { %p2505_p13 = pneg %p2504_p0 }
 0x7f5   : > { %p2511_p8 = por %p2510_p3, %p2509_p12 }
 0x7f7   : > { %p2512_p10 = pnand %p2511_p8, %p2505_p13 }
 0x7f9   : > { %2515 = shalt.err (!%p2512_p10)
}
 0x7fa   : > { %2214 = dma.vmem_to_hbm [thread:$0]  (%p3154_p6), %s3054_s13, 128, %s3052_s30, %s1622_s7  }
 0x7fb PF: > { %s1663_s12 = sand.u32 1, %s2550_s21   ;;  %p3155_p7 = scmp.ne.s32.totalorder %s3144_s9, 0 }
 0x7fc   : > { %p3156_p11 = scmp.ge.s32.totalorder %s2562_s24, 2  ;;  %s1664_s15 = scalar_lea.sflag [#allocation6], %s1663_s12 }
 0x7fe   : > { %p2228_p2 = pnand %p3156_p11, %p3155_p7 }
 0x800   : > { %2541 = dma.done.wait (!%p2228_p2), %s1664_s15, 512  }
 0x801   : > { %2543 = vsyncadd (!%p2228_p2), %s1664_s15, 4294966784  ;;  %s1673_s23 = scalar_lea.sflag [#allocation12], %s1663_s12 }
 0x802   : > { %2545 = dma.done.wait (!%p2228_p2), %s1673_s23, 128  }
 0x803   : > { %2547 = vsyncadd (!%p2228_p2), %s1673_s23, 4294967168  ;;  %s3157_s24 = sld [smem:[#allocation18_spill]]  ;;  %s3158_s8 = sld [smem:[#allocation17_spill]] }
 0x804   : > { %s3159_s23 = sld [smem:[#allocation19_spill]]  ;;  %s3160_s21 = smov %s2554_s22 }
 0x809   : > { %p26_p6 = scmp.ge.s32.totalorder %s3157_s24, 4   ;;  %s3161_s22 = smov %s3158_s8 }
 0x80b   :  { %28 = sbr.rel (!%p26_p6) target bundleno = 11 (0xb), region = 146 }
 0x812   :  { %1678 = vsyncpa [#allocation5], 1 }
 0x813   :  { %1680 = vsyncpa [#allocation5 + $0x1], 1 }
 0x814   :  { %1681 = vsyncpa [#allocation8], 1 }
 0x815   :  { %1683 = vsyncpa [#allocation8 + $0x1], 1 }
 0x816   :  { %1684 = vsyncpa [#allocation6], 1 }
 0x817   :  { %1686 = vsyncpa [#allocation6 + $0x1], 1 }
 0x818   :  { %1687 = vsyncpa [#allocation12], 1 }
 0x819   :  { %1689 = vsyncpa [#allocation12 + $0x1], 1 }

</bundles_post_ra>
